<compile_context>
chip_gen: v5e
topology: v5e:2x2
jax: 0.10.0
libtpu: 0.0.40
codegen_flags: <defaults>
</compile_context>

<pallas_src>
import numpy as np
import jax
import jax.numpy as jnp
from jax.experimental import pallas as pl
from jax.experimental.pallas import tpu as pltpu


def _round_up(a, m):
    return (a + m - 1) // m * m


def dqn_kernel(x_ref, w1e_ref, b1e_ref, w2e_ref, b2e_ref,
               wf1_ref, bf1_ref, wf2_ref, bf2_ref, out_ref):
    # Preprocess: log2(x + 1) / 11   (VPU/EUP, f32)
    xp = jnp.log2(x_ref[...] + 1.0) * (1.0 / 11.0)                      # (TB, G*G)

    # conv1 as one im2col matmul; columns already replicated & ordered so each
    # conv2 patch is a contiguous 128-lane span.
    h1 = jnp.maximum(
        jnp.dot(xp, w1e_ref[...], preferred_element_type=jnp.float32)
        + b1e_ref[...], 0.0)                                            # (TB, P*128)

    # conv2 for all output positions at once (block-diagonal weight); output is
    # already the (h, w, c)-ordered flatten -- no concats, no scratch slab.
    h2 = jnp.maximum(
        jnp.dot(h1, w2e_ref[...], preferred_element_type=jnp.float32)
        + b2e_ref[...], 0.0)                                            # (TB, P*64)

    # FC1: single K = P*64 (=256) matmul against the original flat weight.
    fc1 = jnp.maximum(
        jnp.dot(h2, wf1_ref[...], preferred_element_type=jnp.float32)
        + bf1_ref[...], 0.0)                                            # (TB, hidden)

    # FC2 (hidden -> 4), zero-padded to 128 lanes -> unmasked full-lane store.
    out_ref[...] = (
        jnp.dot(fc1, wf2_ref[...], preferred_element_type=jnp.float32)
        + bf2_ref[...]).astype(out_ref.dtype)                           # (TB, 128)


def prepare_params(params, grid_size):
    """Host-side (one-time) weight expansion / re-layout for the kernel."""
    G = grid_size
    H2 = G - 2
    npos = H2 * H2
    c1 = params["w1"].shape[-1]          # 32
    c2 = params["w2"].shape[-1]          # 64
    hidden = params["wf1"].shape[-1]

    w1 = np.asarray(params["w1"], np.float32)                     # (2,2,1,c1) HWIO
    b1 = np.asarray(params["b1"], np.float32)
    w2 = np.asarray(params["w2"], np.float32).reshape(4 * c1, c2)  # rows (kh,kw,cin)
    b2 = np.asarray(params["b2"], np.float32)

    # conv1 expanded weight: (G*G, npos*4*c1).  Column (i,j,kh2,kw2,c) holds the
    # conv1 weight contribution of input pixel `row` to h1[i+kh2, j+kw2, c].
    w1e = np.zeros((G * G, npos * 4 * c1), np.float32)
    b1e = np.zeros((1, npos * 4 * c1), np.float32)
    for i in range(H2):
        for j in range(H2):
            for kh2 in range(2):
                for kw2 in range(2):
                    p, q = i + kh2, j + kw2
                    col0 = ((i * H2 + j) * 4 + kh2 * 2 + kw2) * c1
                    b1e[0, col0:col0 + c1] = b1
                    for kh1 in range(2):
                        for kw1 in range(2):
                            row = (p + kh1) * G + (q + kw1)
                            w1e[row, col0:col0 + c1] = w1[kh1, kw1, 0, :]

    # conv2 block-diagonal weight: (npos*4*c1, npos*c2).  The zero off-diagonal
    # blocks are idle-MXU work but keep conv2 a single unmasked matmul whose
    # output is exactly the (h, w, c) flatten that FC1 consumes.
    K = 4 * c1
    w2e = np.zeros((npos * K, npos * c2), np.float32)
    b2e = np.zeros((1, npos * c2), np.float32)
    for pos in range(npos):
        w2e[pos * K:(pos + 1) * K, pos * c2:(pos + 1) * c2] = w2
        b2e[0, pos * c2:(pos + 1) * c2] = b2

    wf1f = np.asarray(params["wf1"], np.float32).reshape(npos * c2, hidden)
    bf1r = np.asarray(params["bf1"], np.float32).reshape(1, hidden)

    # FC2 zero-padded to 128 output lanes.
    wf2p = np.zeros((hidden, 128), np.float32)
    wf2p[:, :4] = np.asarray(params["wf2"], np.float32)
    bf2p = np.zeros((1, 128), np.float32)
    bf2p[0, :4] = np.asarray(params["bf2"], np.float32)

    return tuple(jnp.asarray(a) for a in
                 (w1e, b1e, w2e, b2e, wf1f, bf1r, wf2p, bf2p))


def dqn_forward(x, prepped, *, batch_tile=128):
    B, G, _ = x.shape
    w1e, b1e, w2e, b2e, wf1f, bf1r, wf2p, bf2p = prepped
    out_lanes = wf2p.shape[-1]

    # Lane-dense 2-D input slab (B, G*G) instead of (B, G, G).
    x_flat = x.reshape(B, G * G).astype(jnp.float32)

    TB = min(batch_tile, _round_up(B, 8))
    Bp = _round_up(B, TB)
    if Bp != B:
        x_flat = jnp.pad(x_flat, ((0, Bp - B), (0, 0)))

    def const_spec(a):
        return pl.BlockSpec(a.shape, lambda i: (0, 0))

    out = pl.pallas_call(
        dqn_kernel,
        out_shape=jax.ShapeDtypeStruct((Bp, out_lanes), jnp.float32),
        grid=(Bp // TB,),
        in_specs=[
            pl.BlockSpec((TB, G * G), lambda i: (i, 0)),   # x, tiled over batch
            const_spec(w1e), const_spec(b1e),
            const_spec(w2e), const_spec(b2e),
            const_spec(wf1f), const_spec(bf1r),
            const_spec(wf2p), const_spec(bf2p),
        ],
        out_specs=pl.BlockSpec((TB, out_lanes), lambda i: (i, 0)),
        compiler_params=pltpu.CompilerParams(
            dimension_semantics=("parallel",)),              # batch tiles independent
    )(x_flat, w1e, b1e, w2e, b2e, wf1f, bf1r, wf2p, bf2p)

    return out[:B, :4]


def make_params(key, grid_size, hidden_size=256):
    H2 = grid_size - 2
    ks = jax.random.split(key, 8)
    s = 0.1
    return dict(
        w1=jax.random.normal(ks[0], (2, 2, 1, 32), jnp.float32) * s,    # HWIO
        b1=jax.random.normal(ks[1], (32,), jnp.float32) * s,
        w2=jax.random.normal(ks[2], (2, 2, 32, 64), jnp.float32) * s,   # HWIO
        b2=jax.random.normal(ks[3], (64,), jnp.float32) * s,
        wf1=jax.random.normal(ks[4], (H2, H2, 64, hidden_size), jnp.float32) * s,
        bf1=jax.random.normal(ks[5], (hidden_size,), jnp.float32) * s,
        wf2=jax.random.normal(ks[6], (hidden_size, 4), jnp.float32) * s,
        bf2=jax.random.normal(ks[7], (4,), jnp.float32) * s,
    )


def dqn_reference(x, params):
    """Pure-JAX reference matching the PyTorch module semantics."""
    xp = (jnp.log2(x + 1.0) / 11.0)[:, :, :, None]              # NHWC (B, G, G, 1)
    h1 = jax.lax.conv_general_dilated(
        xp, params["w1"], (1, 1), "VALID",
        dimension_numbers=("NHWC", "HWIO", "NHWC")) + params["b1"]
    h1 = jnp.maximum(h1, 0.0)
    h2 = jax.lax.conv_general_dilated(
        h1, params["w2"], (1, 1), "VALID",
        dimension_numbers=("NHWC", "HWIO", "NHWC")) + params["b2"]
    h2 = jnp.maximum(h2, 0.0)
    B = x.shape[0]
    hidden = params["wf1"].shape[-1]
    flat = h2.reshape(B, -1)                                    # (h, w, c) ordering
    fc1 = jnp.maximum(flat @ params["wf1"].reshape(-1, hidden) + params["bf1"], 0.0)
    return fc1 @ params["wf2"] + params["bf2"]


if __name__ == "__main__":
    key = jax.random.PRNGKey(0)
    k_x, k_p = jax.random.split(key)

    grid_size = 4       # 2048 board
    hidden = 256        # module default; conv_out = (4-2)*(4-2)*64 = 256
    batch = 256         # tiled into TB=128 batch tiles -> grid=(2,), "parallel"

    # 2048-like tile values (any nonnegative floats are fine for log2(x+1)).
    x = jax.random.uniform(k_x, (batch, grid_size, grid_size),
                           dtype=jnp.float32, minval=0.0, maxval=2048.0)
    params = make_params(k_p, grid_size, hidden)
    prepped = prepare_params(params, grid_size)

    out = dqn_forward(x, prepped, batch_tile=128)
    out = jax.block_until_ready(out)

    ref = dqn_reference(x, params)
    np.testing.assert_allclose(np.asarray(out), np.asarray(ref), rtol=2e-3, atol=2e-3)

    print("KERNEL_OK")
</pallas_src>

<mosaic_0001>
module attributes {stable_mosaic.version = 11 : i64} {
  func.func @dqn_kernel(%arg0: i32, %arg1: memref<128x16xf32, #tpu.memory_space<vmem>>, %arg2: memref<16x512xf32, #tpu.memory_space<vmem>>, %arg3: memref<1x512xf32, #tpu.memory_space<vmem>>, %arg4: memref<512x256xf32, #tpu.memory_space<vmem>>, %arg5: memref<1x256xf32, #tpu.memory_space<vmem>>, %arg6: memref<256x256xf32, #tpu.memory_space<vmem>>, %arg7: memref<1x256xf32, #tpu.memory_space<vmem>>, %arg8: memref<256x128xf32, #tpu.memory_space<vmem>>, %arg9: memref<1x128xf32, #tpu.memory_space<vmem>>, %arg10: memref<128x128xf32, #tpu.memory_space<vmem>>) attributes {dimension_semantics = [#tpu.dimension_semantics<parallel>], iteration_bounds = array<i64: 2>, scalar_prefetch = 0 : i64, scratch_operands = 0 : i64, tpu.core_type = #tpu.core_type<tc>, window_params = [{transform_indices = @transform_0, window_bounds = array<i64: 128, 16>}, {pipeline_mode = #tpu.pipeline_mode<synchronous>, transform_indices = @transform_1, window_bounds = array<i64: 16, 512>}, {pipeline_mode = #tpu.pipeline_mode<synchronous>, transform_indices = @transform_2, window_bounds = array<i64: 1, 512>}, {pipeline_mode = #tpu.pipeline_mode<synchronous>, transform_indices = @transform_3, window_bounds = array<i64: 512, 256>}, {pipeline_mode = #tpu.pipeline_mode<synchronous>, transform_indices = @transform_4, window_bounds = array<i64: 1, 256>}, {pipeline_mode = #tpu.pipeline_mode<synchronous>, transform_indices = @transform_5, window_bounds = array<i64: 256, 256>}, {pipeline_mode = #tpu.pipeline_mode<synchronous>, transform_indices = @transform_6, window_bounds = array<i64: 1, 256>}, {pipeline_mode = #tpu.pipeline_mode<synchronous>, transform_indices = @transform_7, window_bounds = array<i64: 256, 128>}, {pipeline_mode = #tpu.pipeline_mode<synchronous>, transform_indices = @transform_8, window_bounds = array<i64: 1, 128>}, {transform_indices = @transform_9, window_bounds = array<i64: 128, 128>}]} {
    %c0 = arith.constant 0 : index
    %c0_0 = arith.constant 0 : index
    %0 = vector.load %arg1[%c0, %c0_0] : memref<128x16xf32, #tpu.memory_space<vmem>>, vector<128x16xf32>
    %cst = arith.constant 1.000000e+00 : f32
    %1 = vector.broadcast %cst : f32 to vector<128x16xf32>
    %2 = arith.addf %0, %1 : vector<128x16xf32>
    %3 = math.log %2 : vector<128x16xf32>
    %cst_1 = arith.constant 2.000000e+00 : f32
    %4 = math.log %cst_1 : f32
    %5 = vector.broadcast %4 : f32 to vector<128x16xf32>
    %6 = arith.divf %3, %5 : vector<128x16xf32>
    %cst_2 = arith.constant 0.0909090936 : f32
    %7 = vector.broadcast %cst_2 : f32 to vector<128x16xf32>
    %8 = arith.mulf %6, %7 : vector<128x16xf32>
    %c0_3 = arith.constant 0 : index
    %c0_4 = arith.constant 0 : index
    %9 = vector.load %arg2[%c0_3, %c0_4] : memref<16x512xf32, #tpu.memory_space<vmem>>, vector<16x512xf32>
    %cst_5 = arith.constant dense<0.000000e+00> : vector<128x512xf32>
    %10 = tpu.matmul %8, %9, %cst_5 {dimension_numbers = #tpu.dot_dimension_numbers<[1], [0], [0], [1], [0, 0, 1, 1], [], []>} : vector<128x16xf32>, vector<16x512xf32>, vector<128x512xf32> -> vector<128x512xf32>
    %c0_6 = arith.constant 0 : index
    %c0_7 = arith.constant 0 : index
    %11 = vector.load %arg3[%c0_6, %c0_7] : memref<1x512xf32, #tpu.memory_space<vmem>>, vector<1x512xf32>
    %12 = vector.broadcast %11 : vector<1x512xf32> to vector<128x512xf32>
    %13 = arith.addf %10, %12 : vector<128x512xf32>
    %cst_8 = arith.constant 0.000000e+00 : f32
    %14 = vector.broadcast %cst_8 : f32 to vector<128x512xf32>
    %15 = arith.maximumf %13, %14 : vector<128x512xf32>
    %c0_9 = arith.constant 0 : index
    %c0_10 = arith.constant 0 : index
    %16 = vector.load %arg4[%c0_9, %c0_10] : memref<512x256xf32, #tpu.memory_space<vmem>>, vector<512x256xf32>
    %cst_11 = arith.constant dense<0.000000e+00> : vector<128x256xf32>
    %17 = tpu.matmul %15, %16, %cst_11 {dimension_numbers = #tpu.dot_dimension_numbers<[1], [0], [0], [1], [0, 0, 1, 1], [], []>} : vector<128x512xf32>, vector<512x256xf32>, vector<128x256xf32> -> vector<128x256xf32>
    %c0_12 = arith.constant 0 : index
    %c0_13 = arith.constant 0 : index
    %18 = vector.load %arg5[%c0_12, %c0_13] : memref<1x256xf32, #tpu.memory_space<vmem>>, vector<1x256xf32>
    %19 = vector.broadcast %18 : vector<1x256xf32> to vector<128x256xf32>
    %20 = arith.addf %17, %19 : vector<128x256xf32>
    %cst_14 = arith.constant 0.000000e+00 : f32
    %21 = vector.broadcast %cst_14 : f32 to vector<128x256xf32>
    %22 = arith.maximumf %20, %21 : vector<128x256xf32>
    %c0_15 = arith.constant 0 : index
    %c0_16 = arith.constant 0 : index
    %23 = vector.load %arg6[%c0_15, %c0_16] : memref<256x256xf32, #tpu.memory_space<vmem>>, vector<256x256xf32>
    %cst_17 = arith.constant dense<0.000000e+00> : vector<128x256xf32>
    %24 = tpu.matmul %22, %23, %cst_17 {dimension_numbers = #tpu.dot_dimension_numbers<[1], [0], [0], [1], [0, 0, 1, 1], [], []>} : vector<128x256xf32>, vector<256x256xf32>, vector<128x256xf32> -> vector<128x256xf32>
    %c0_18 = arith.constant 0 : index
    %c0_19 = arith.constant 0 : index
    %25 = vector.load %arg7[%c0_18, %c0_19] : memref<1x256xf32, #tpu.memory_space<vmem>>, vector<1x256xf32>
    %26 = vector.broadcast %25 : vector<1x256xf32> to vector<128x256xf32>
    %27 = arith.addf %24, %26 : vector<128x256xf32>
    %cst_20 = arith.constant 0.000000e+00 : f32
    %28 = vector.broadcast %cst_20 : f32 to vector<128x256xf32>
    %29 = arith.maximumf %27, %28 : vector<128x256xf32>
    %c0_21 = arith.constant 0 : index
    %c0_22 = arith.constant 0 : index
    %30 = vector.load %arg8[%c0_21, %c0_22] : memref<256x128xf32, #tpu.memory_space<vmem>>, vector<256x128xf32>
    %cst_23 = arith.constant dense<0.000000e+00> : vector<128x128xf32>
    %31 = tpu.matmul %29, %30, %cst_23 {dimension_numbers = #tpu.dot_dimension_numbers<[1], [0], [0], [1], [0, 0, 1, 1], [], []>} : vector<128x256xf32>, vector<256x128xf32>, vector<128x128xf32> -> vector<128x128xf32>
    %c0_24 = arith.constant 0 : index
    %c0_25 = arith.constant 0 : index
    %32 = vector.load %arg9[%c0_24, %c0_25] : memref<1x128xf32, #tpu.memory_space<vmem>>, vector<1x128xf32>
    %33 = vector.broadcast %32 : vector<1x128xf32> to vector<128x128xf32>
    %34 = arith.addf %31, %33 : vector<128x128xf32>
    %c0_26 = arith.constant 0 : index
    %c0_27 = arith.constant 0 : index
    %35 = vector.load %arg10[%c0_26, %c0_27] : memref<128x128xf32, #tpu.memory_space<vmem>>, vector<128x128xf32>
    tpu.vector_store %arg10[%c0_26, %c0_27], %34 {strides = array<i32>} : memref<128x128xf32, #tpu.memory_space<vmem>>, vector<128x128xf32>,
    return
  }
  func.func @transform_0(%arg0: i32) -> (i32, i32) {
    %c0_i32 = arith.constant 0 : i32
    %c0_i32_0 = arith.constant 0 : i32
    return %arg0, %c0_i32 : i32, i32
  }
  func.func @transform_1(%arg0: i32) -> (i32, i32) {
    %c0_i32 = arith.constant 0 : i32
    %c0_i32_0 = arith.constant 0 : i32
    %c0_i32_1 = arith.constant 0 : i32
    return %c0_i32, %c0_i32_0 : i32, i32
  }
  func.func @transform_2(%arg0: i32) -> (i32, i32) {
    %c0_i32 = arith.constant 0 : i32
    %c0_i32_0 = arith.constant 0 : i32
    %c0_i32_1 = arith.constant 0 : i32
    return %c0_i32, %c0_i32_0 : i32, i32
  }
  func.func @transform_3(%arg0: i32) -> (i32, i32) {
    %c0_i32 = arith.constant 0 : i32
    %c0_i32_0 = arith.constant 0 : i32
    %c0_i32_1 = arith.constant 0 : i32
    return %c0_i32, %c0_i32_0 : i32, i32
  }
  func.func @transform_4(%arg0: i32) -> (i32, i32) {
    %c0_i32 = arith.constant 0 : i32
    %c0_i32_0 = arith.constant 0 : i32
    %c0_i32_1 = arith.constant 0 : i32
    return %c0_i32, %c0_i32_0 : i32, i32
  }
  func.func @transform_5(%arg0: i32) -> (i32, i32) {
    %c0_i32 = arith.constant 0 : i32
    %c0_i32_0 = arith.constant 0 : i32
    %c0_i32_1 = arith.constant 0 : i32
    return %c0_i32, %c0_i32_0 : i32, i32
  }
  func.func @transform_6(%arg0: i32) -> (i32, i32) {
    %c0_i32 = arith.constant 0 : i32
    %c0_i32_0 = arith.constant 0 : i32
    %c0_i32_1 = arith.constant 0 : i32
    return %c0_i32, %c0_i32_0 : i32, i32
  }
  func.func @transform_7(%arg0: i32) -> (i32, i32) {
    %c0_i32 = arith.constant 0 : i32
    %c0_i32_0 = arith.constant 0 : i32
    %c0_i32_1 = arith.constant 0 : i32
    return %c0_i32, %c0_i32_0 : i32, i32
  }
  func.func @transform_8(%arg0: i32) -> (i32, i32) {
    %c0_i32 = arith.constant 0 : i32
    %c0_i32_0 = arith.constant 0 : i32
    %c0_i32_1 = arith.constant 0 : i32
    return %c0_i32, %c0_i32_0 : i32, i32
  }
  func.func @transform_9(%arg0: i32) -> (i32, i32) {
    %c0_i32 = arith.constant 0 : i32
    %c0_i32_0 = arith.constant 0 : i32
    return %arg0, %c0_i32 : i32, i32
  }
}

</mosaic_0001>

<bundles_post_ra>
// kernel: tpu_custom_call.1
= control target key start
LH: loop header
LB: loop body
LE: loop exit
PB: predicated region body
PF: predicated region fallthrough
CT: control target
= control target key end

     0   :  { %s4107_s0 = inlined_call_operand.vmem [shape: f32[256,16], index: 0, kind: input, shape index: {}]   ;;  %s4108_s1 = inlined_call_operand.hbm [shape: f32[16,512], index: 1, kind: input, shape index: {}]   ;;  %s4109_s2 = inlined_call_operand.vmem [shape: f32[1,512], index: 2, kind: input, shape index: {}]   ;;  %s4110_s3 = inlined_call_operand.hbm [shape: f32[512,256], index: 3, kind: input, shape index: {}]   ;;  %s4111_s4 = inlined_call_operand.vmem [shape: f32[1,256], index: 4, kind: input, shape index: {}]   ;;  %s4112_s5 = inlined_call_operand.hbm [shape: f32[256,256], index: 5, kind: input, shape index: {}]   ;;  %s4113_s6 = inlined_call_operand.vmem [shape: f32[1,256], index: 6, kind: input, shape index: {}]   ;;  %s4114_s7 = inlined_call_operand.vmem [shape: f32[256,128], index: 7, kind: input, shape index: {}]   ;;  %s4115_s8 = inlined_call_operand.vmem [shape: f32[1,128], index: 8, kind: input, shape index: {}]   ;;  %s4116_s9 = inlined_call_operand.hbm [shape: f32[256,128], index: 9, kind: output, shape index: {}]  }
   0x1   :  { %4185 = sst [smem:[#allocation24_spill]] %s4108_s1 }
   0x2   :  { %4186 = sst [smem:[#allocation25_spill]] %s4110_s3 }
   0x3   :  { %14 = vsyncpa [#allocation3], 0 }
   0x4   :  { %15 = vsyncpa [#allocation6], 0 }
   0x5   :  { %16 = vsyncpa [#allocation4], 0 }
   0x6   :  { %18 = vsyncpa [#allocation4 + $0x1], 0  ;;  %s2638_s30 = smov 0   ;;  %s2640_s10 = smov 0  }
   0x7   :  { %s2642_s11 = smov 0   ;;  %s2644_s12 = smov 0  }
   0x8 LB: > { %4187 = sst [smem:[#allocation12_spill]] %s2572_s11  ;;  %s2659_s13 = sadd.s32 4294967295, %s2576_s12   ;;  %s2576_s12 = sphi %s2644_s12, %s4277_s12   ;;  %s2572_s11 = sphi %s2642_s11, %s4274_s11   ;;  %s2568_s10 = sphi %s2640_s10, %s4276_s10   ;;  %s2564_s30 = sphi %s2638_s30, %s4275_s30  }
   0x9   : > { %s2217_s14 = sadd.s32 4294967294, %s2576_s12   ;;  %s2663_s15 = sadd.s32 1, %s2576_s12  }
   0xa   : > { %s225_s16 = sadd.s32 1, %s2572_s11  ;;  %s222_s17 = ssub.s32 %s2576_s12, %s2663_s15 }
   0xb   : > { %p235_p0 = scmp.ne.s32.totalorder %s2572_s11, %s2568_s10  ;;  %p223_p1 = scmp.eq.s32.totalorder %s222_s17, 0 }
   0xc   : > { %p236_p2 = scmp.eq.s32.totalorder %s2659_s13, 1  ;;  %p241_p3 = scmp.ne.s32.totalorder %s2568_s10, %s2564_s30 }
   0xd   : > { %p242_p4 = scmp.eq.s32.totalorder %s2217_s14, 1  ;;  %p2218_p7 = scmp.ge.s32.totalorder %s2576_s12, 1 }
   0xe   : > { %s2674_s18 = scalar_select %p223_p1, %s2572_s11, %s225_s16  }
   0xf   : > { %p2676_p5 = por %p236_p2, %p235_p0  ;;  %p2680_p6 = por %p242_p4, %p241_p3 }
  0x10   : > { %4188 = sst [smem:[#allocation13_spill]] %s2674_s18  ;;  %p249_p8 = scmp.lt.s32.totalorder %s2576_s12, 3 }
  0x11   : > { %p2332_p9 = scmp.eq.s32.totalorder %s2659_s13, 0  ;;  %s4192_s3 = sld [smem:[#allocation25_spill]] }
  0x12   : > { %p2687_p10 = pnand %p2218_p7, %p249_p8  ;;  %s2578_s25 = smov [#allocation5]  }
  0x13   : > { %s279_s26 = sshll.u32 %s2578_s25, 4  ;;  %s4194_s1 = sld [smem:[#allocation24_spill]]  ;;  %s280_s26 = int_to_ptr.vmem [resolvable:$true] %s279_s26 }
  0x14   : > { %p2318_p11 = pneg %p2687_p10  ;;  %s2579_s16 = smov 256  }
  0x15   : > { %s2580_s17 = smov 16   ;;  %s2581_s22 = smov [#allocation2]  }
  0x16   : > { %p2698_p12 = pnand %p2332_p9, %p2318_p11  ;;  %s262_s23 = sshll.u32 %s2581_s22, 4  ;;  %s263_s23 = int_to_ptr.vmem [resolvable:$true] %s262_s23 }
  0x17   : > { %s277_s24 = sshll.u32 %s4192_s3, 4  ;;  %s2582_s25 = smov 512   ;;  %s278_s24 = int_to_ptr.hbm [resolvable:$true] %s277_s24 }
  0x18   : > { %2324 = dma.hbm_to_vmem [thread:$0]  (!%p2698_p12), %s278_s24, 16384, %s280_s26, [#allocation6], %s2579_s16, %s2579_s16, %s2580_s17  }
  0x19   : > { %s260_s14 = sshll.u32 %s4194_s1, 4  ;;  %s2583_s3 = smov 32   ;;  %s261_s14 = int_to_ptr.hbm [resolvable:$true] %s260_s14 }
  0x1a   : > { %2321 = dma.hbm_to_vmem [thread:$0]  (!%p2698_p12), %s261_s14, 1024, %s263_s23, [#allocation3], %s2582_s25, %s2582_s25, %s2583_s3  }
  0x1b   : > { %s294_s28 = sshll.u32 %s4112_s5, 4  ;;  %s2584_s29 = smov [#allocation7]   ;;  %s295_s28 = int_to_ptr.hbm [resolvable:$true] %s294_s28 }
  0x1c   : > { %s296_s1 = sshll.u32 %s2584_s29, 4  ;;  %330 = sbr.rel (%p2687_p10) target bundleno = 913 (0x391), region = 56  ;;  %s297_s1 = int_to_ptr.vmem [resolvable:$true] %s296_s1 }
  0x1d   : > { %2327 = dma.hbm_to_vmem [thread:$0]  (!%p2698_p12), %s295_s28, 8192, %s297_s1, [#allocation6], %s2579_s16, %s2579_s16, %s2580_s17  }
  0x21   : > { %2551 = dma.done.wait (%p2332_p9), [#allocation3], 1024  }
  0x22   : > { %2553 = vsyncadd (%p2332_p9), [#allocation3], 4294966272 }
  0x23   : > { %2555 = dma.done.wait (%p2332_p9), [#allocation6], 24576  }
  0x24   : > { %2557 = vsyncadd (%p2332_p9), [#allocation6], 4294942720  ;;  %s2228_s3 = sshll.u32 %s2659_s13, 4  ;;  %v2585_v0 = vmov 0.6931472   ;;  %v491_v2 = vld [vmem:[#allocation2 + $0x20] sm:$0xff] }
  0x25   : > { %p378_p13 = scmp.lt.s32.totalorder %s2228_s3, 31  ;;  %2382 = vrcp.f32 %v2585_v0  ;;  %v492_v3 = vld [vmem:[#allocation2 + $0x28] sm:$0xff]  ;;  %v487_v4 = vld [vmem:[#allocation2] sm:$0xff]  ;;  %568 = vmatpush.msra.mxu0 %v491_v2  ;;  %2300 = vmatpush.msra.mxu2 %v491_v2  ;;  %v493_v11 = vld [vmem:[#allocation2 + $0x30] sm:$0xff]  ;;  %vm505_vm1 = vcmask 130048   ;;  %s374_s22 = sand.u32 1, %s2568_s10  }
  0x26   : > { %v488_v5 = vld [vmem:[#allocation2 + $0x8] sm:$0xff]  ;;  %633 = vmatpush.msra.mxu1 %v492_v3  ;;  %2302 = vmatpush.msra.mxu3 %v492_v3  ;;  %v494_v12 = vld [vmem:[#allocation2 + $0x38] sm:$0xff]  ;;  %v489_v44 = vld [vmem:[#allocation2 + $0x10] sm:$0xff]  ;;  %s2227_s28 = sshll.u32 %s374_s22, 7  ;;  %s2526_s17 = scalar_lea.hbm %s4116_s9, 256 }
  0x27   : > { %s4279_s3 = smov (!%p378_p13, %s2228_s3), 31  ;;  %569 = vmatpush.msra.mxu0 %v487_v4  ;;  %2301 = vmatpush.msra.mxu2 %v487_v4  ;;  %v490_v45 = vld [vmem:[#allocation2 + $0x18] sm:$0xff]  ;;  %s4040_s29 = scalar_lea.vmem [#allocation8], %s2227_s28 }
  0x28   : > { %s2229_s1 = sshll.u32 %s4279_s3, 3  ;;  %634 = vmatpush.msra.mxu1 %v488_v5  ;;  %2303 = vmatpush.msra.mxu3 %v488_v5  ;;  %s2299_s3 = sshll.u32 %s2659_s13, 7 }
  0x29   : > { %s2728_s21 = scalar_lea.vmem %s4107_s0, %s2229_s1  ;;  %698 = vmatpush.msrb.mxu2 %v493_v11  ;;  %s2120_s18 = scalar_lea.hbm %s4116_s9, %s2299_s3 }
  0x2a   : > { %v384_v6 = vld [vmem:[%s2728_s21] sm:$0xff]  ;;  %v385_v13 = vld [vmem:[%s2728_s21 + $0x8] sm:$0xff]  ;;  %763 = vmatpush.msrb.mxu3 %v494_v12  ;;  %v386_v19 = vld [vmem:[%s2728_s21 + $0x10] sm:$0xff]  ;;  %s2123_s24 = sshll.u32 %s2120_s18, 4  ;;  %s2109_s13 = scalar_lea.sflag [#allocation4], %s374_s22  ;;  %s2124_s24 = int_to_ptr.hbm [resolvable:$true] %s2123_s24 }
  0x2b   : > { %v2383_v1 = vpop.eup %2382  ;;  %v392_v8 = vld [vmem:[%s2728_s21 + $0x40] sm:$0xff]  ;;  %v400_v9 = vadd.f32 1.0, %v384_v6  ;;  %v401_v15 = vadd.f32 1.0, %v385_v13  ;;  %v393_v16 = vld [vmem:[%s2728_s21 + $0x48] sm:$0xff]  ;;  %v394_v20 = vld [vmem:[%s2728_s21 + $0x50] sm:$0xff]  ;;  %v402_v22 = vadd.f32 1.0, %v386_v19  ;;  %699 = vmatpush.msrb.mxu2 %v489_v44 }
  0x2c   : > { %v449_v7 = vmul.f32 0.6931472, %v2383_v1  ;;  %v408_v10 = vadd.f32 1.0, %v392_v8  ;;  %v409_v17 = vadd.f32 1.0, %v393_v16  ;;  %vm453_vm0 = vweird.f32 %v2383_v1  ;;  %v387_v33 = vld [vmem:[%s2728_s21 + $0x18] sm:$0xff]  ;;  %764 = vmatpush.msrb.mxu3 %v490_v45  ;;  %v388_v49 = vld [vmem:[%s2728_s21 + $0x20] sm:$0xff] }
  0x2d   : > { %2384 = vlog2.f32 %v400_v9  ;;  %v410_v23 = vadd.f32 1.0, %v394_v20  ;;  %v395_v36 = vld [vmem:[%s2728_s21 + $0x58] sm:$0xff]  ;;  %v403_v39 = vadd.f32 1.0, %v387_v33  ;;  %v396_v52 = vld [vmem:[%s2728_s21 + $0x60] sm:$0xff]  ;;  %v404_v53 = vadd.f32 1.0, %v388_v49  ;;  %v389_v61 = vld [vmem:[%s2728_s21 + $0x28] sm:$0xff] }
  0x2e   : > { %v450_v14 = vsub.f32 1.0, %v449_v7  ;;  %2386 = vlog2.f32 %v408_v10  ;;  %v411_v41 = vadd.f32 1.0, %v395_v36  ;;  %v412_v55 = vadd.f32 1.0, %v396_v52  ;;  %v397_v0 = vld [vmem:[%s2728_s21 + $0x68] sm:$0xff]  ;;  %v390_v9 = vld [vmem:[%s2728_s21 + $0x30] sm:$0xff]  ;;  %v970_v52 = vld [vmem:[#allocation5 + $0x2e0] sm:$0xff] }
  0x2f   : > { %2388 = vlog2.f32 %v401_v15  ;;  %v413_v3 = vadd.f32 1.0, %v397_v0  ;;  %v398_v12 = vld [vmem:[%s2728_s21 + $0x70] sm:$0xff]  ;;  %v406_v13 = vadd.f32 1.0, %v390_v9  ;;  %v938_v0 = vld [vmem:[#allocation5 + $0x1e0] sm:$0xff]  ;;  %s2520_s26 = sshra.s32 %s2124_s24, 4  ;;  %s2521_s26 = int_to_ptr.hbm [resolvable:$true] %s2520_s26 }
  0x30   : > { %v451_v18 = vmul.f32 %v2383_v1, %v450_v14  ;;  %2390 = vlog2.f32 %v409_v17  ;;  %v414_v15 = vadd.f32 1.0, %v398_v12  ;;  %v898_v9 = vld [vmem:[#allocation5 + $0xa0] sm:$0xff]  ;;  %v896_v12 = vld [vmem:[#allocation5 + $0x90] sm:$0xff]  ;;  %s2522_s27 = scalar_lea.hbm %s2521_s26, 128  ;;  %p2527_p3 = scmp.lt.s32.totalorder %s2521_s26, %s4116_s9 }
  0x31   : > { %2392 = vlog2.f32 %v402_v22  ;;  %p2523_p0 = scmp.ne.s32.totalorder %s2521_s26, %s2522_s27  ;;  %p2528_p4 = scmp.lt.s32.totalorder %s2526_s17, %s2522_s27 }
  0x32   : > { %v452_v21 = vadd.f32 %v2383_v1, %v451_v18  ;;  %2394 = vlog2.f32 %v410_v23 }
  0x33   : > { %v2385_v24 = vpop.eup %2384  ;;  %2396 = vlog2.f32 %v403_v39  ;;  %p2524_p1 = pnand %p2523_p0, %p2676_p5  ;;  %p2529_p7 = por %p2528_p4, %p2527_p3 }
  0x34   : > { %v2736_v25 = vsel %vm453_vm0, %v2383_v1, %v452_v21  ;;  %v2387_v26 = vpop.eup %2386  ;;  %v417_v27 = vmul.f32 0.6931472, %v2385_v24  ;;  %2398 = vlog2.f32 %v411_v41  ;;  %v405_v1 = vadd.f32 1.0, %v389_v61  ;;  %v391_v21 = vld [vmem:[%s2728_s21 + $0x38] sm:$0xff]  ;;  %v972_v41 = vld [vmem:[#allocation5 + $0x2f0] sm:$0xff] }
  0x35   : > { %v2389_v28 = vpop.eup %2388  ;;  %v433_v29 = vmul.f32 0.6931472, %v2387_v26  ;;  %2400 = vlog2.f32 %v404_v53  ;;  %v399_v24 = vld [vmem:[%s2728_s21 + $0x78] sm:$0xff]  ;;  %v407_v26 = vadd.f32 1.0, %v391_v21  ;;  %v1002_v53 = vld [vmem:[#allocation5 + $0x3e0] sm:$0xff]  ;;  %v940_v61 = vld [vmem:[#allocation5 + $0x1f0] sm:$0xff]  ;;  %p2525_p2 = pneg %p2524_p1 }
  0x36   : > { %v2391_v30 = vpop.eup %2390  ;;  %v455_v31 = vmul.f32 %v2736_v25, %v417_v27  ;;  %v419_v32 = vmul.f32 0.6931472, %v2389_v28  ;;  %2402 = vlog2.f32 %v412_v55  ;;  %v415_v28 = vadd.f32 1.0, %v399_v24  ;;  %1077 = vmatpush.msrb.mxu1 %v940_v61  ;;  %v922_v21 = vld [vmem:[#allocation5 + $0x160] sm:$0xff]  ;;  %v920_v24 = vld [vmem:[#allocation5 + $0x150] sm:$0xff]  ;;  %s2121_s21 = sshll.u32 %s4040_s29, 4  ;;  %s2122_s21 = int_to_ptr.vmem [resolvable:$true] %s2121_s21 }
  0x37   : > { %v463_v34 = vmul.f32 %v2736_v25, %v433_v29  ;;  %v435_v35 = vmul.f32 0.6931472, %v2391_v30  ;;  %v2393_v42 = vpop.eup %2392  ;;  %2404 = vlog2.f32 %v405_v1  ;;  %v904_v1 = vld [vmem:[#allocation5 + $0xd0] sm:$0xff]  ;;  %p2530_p8 = pnand %p2529_p7, %p2525_p2 }
  0x38   : > { %v2742_v37 = vmul.f32 0.09090909, %v455_v31  ;;  %v456_v40 = vmul.f32 %v2736_v25, %v419_v32  ;;  %v2395_v46 = vpop.eup %2394  ;;  %v421_v48 = vmul.f32 0.6931472, %v2393_v42  ;;  %2406 = vlog2.f32 %v413_v3  ;;  %v1004_v42 = vld [vmem:[#allocation5 + $0x3f0] sm:$0xff]  ;;  %1078 = vmatpush.msrb.mxu1 %v938_v0  ;;  %v902_v3 = vld [vmem:[#allocation5 + $0xc0] sm:$0xff] }
  0x39   : > { %v2744_v38 = vmul.f32 0.09090909, %v463_v34  ;;  %v464_v43 = vmul.f32 %v2736_v25, %v435_v35  ;;  %v437_v51 = vmul.f32 0.6931472, %v2395_v46  ;;  %v2397_v56 = vpop.eup %2396  ;;  %2408 = vlog2.f32 %v406_v13  ;;  %v928_v13 = vld [vmem:[#allocation5 + $0x190] sm:$0xff] }
  0x3a   : > { %2230 = vmatmul.msk.f32.vlgmr.msra.gmra.mxu0 %vm505_vm1, %v2742_v37  ;;  %2246 = vmatmul.msk.f32.vlgmr.msra.gmra.mxu1 %vm505_vm1, %v2742_v37  ;;  %v2756_v47 = vmul.f32 0.09090909, %v456_v40  ;;  %v457_v54 = vmul.f32 %v2736_v25, %v421_v48  ;;  %v2399_v58 = vpop.eup %2398  ;;  %v423_v60 = vmul.f32 0.6931472, %v2397_v56  ;;  %2410 = vlog2.f32 %v414_v15  ;;  %v1000_v56 = vld [vmem:[#allocation5 + $0x3d0] sm:$0xff]  ;;  %v926_v15 = vld [vmem:[#allocation5 + $0x180] sm:$0xff] }
  0x3b   : > { %2238 = vmatmul.msk.f32.vlgmr.msra.gmra.mxu2 %vm505_vm1, %v2744_v38  ;;  %2254 = vmatmul.msk.f32.vlgmr.msra.gmra.mxu3 %vm505_vm1, %v2744_v38  ;;  %v2759_v50 = vmul.f32 0.09090909, %v464_v43  ;;  %v465_v57 = vmul.f32 %v2736_v25, %v437_v51  ;;  %v439_v63 = vmul.f32 0.6931472, %v2399_v58  ;;  %v2401_v4 = vpop.eup %2400  ;;  %2412 = vlog2.f32 %v407_v26  ;;  %v998_v58 = vld [vmem:[#allocation5 + $0x3c0] sm:$0xff] }
  0x3c   : > { %v2772_v59 = vmul.f32 0.09090909, %v457_v54  ;;  %v458_v2 = vmul.f32 %v2736_v25, %v423_v60  ;;  %v2403_v6 = vpop.eup %2402  ;;  %v425_v8 = vmul.f32 0.6931472, %v2401_v4  ;;  %2414 = vlog2.f32 %v415_v28  ;;  %1142 = vmatpush.msra.mxu2 %v972_v41  ;;  %1207 = vmatpush.msra.mxu3 %v1004_v42  ;;  %v908_v60 = vld [vmem:[#allocation5 + $0xf0] sm:$0xff]  ;;  %v934_v4 = vld [vmem:[#allocation5 + $0x1c0] sm:$0xff] }
  0x3d   : > { %v2775_v62 = vmul.f32 0.09090909, %v465_v57  ;;  %v466_v5 = vmul.f32 %v2736_v25, %v439_v63  ;;  %v441_v11 = vmul.f32 0.6931472, %v2403_v6  ;;  %v2405_v16 = vpop.eup %2404  ;;  %v966_v57 = vld [vmem:[#allocation5 + $0x2c0] sm:$0xff]  ;;  %1012 = vmatpush.msrb.mxu0 %v908_v60  ;;  %v900_v6 = vld [vmem:[#allocation5 + $0xb0] sm:$0xff] }
  0x3e   : > { %v2788_v7 = vmul.f32 0.09090909, %v458_v2  ;;  %v459_v14 = vmul.f32 %v2736_v25, %v425_v8  ;;  %v2407_v18 = vpop.eup %2406  ;;  %v427_v20 = vmul.f32 0.6931472, %v2405_v16  ;;  %1143 = vmatpush.msra.mxu2 %v970_v52  ;;  %1208 = vmatpush.msra.mxu3 %v1002_v53  ;;  %v906_v63 = vld [vmem:[#allocation5 + $0xe0] sm:$0xff]  ;;  %v936_v2 = vld [vmem:[#allocation5 + $0x1d0] sm:$0xff] }
  0x3f   : > { %v2791_v10 = vmul.f32 0.09090909, %v466_v5  ;;  %v467_v17 = vmul.f32 %v2736_v25, %v441_v11  ;;  %v443_v23 = vmul.f32 0.6931472, %v2407_v18  ;;  %v2409_v29 = vpop.eup %2408  ;;  %1013 = vmatpush.msrb.mxu0 %v906_v63  ;;  %1079 = vmatpush.msrb.mxu1 %v936_v2  ;;  %v996_v5 = vld [vmem:[#allocation5 + $0x3b0] sm:$0xff]  ;;  %v930_v11 = vld [vmem:[#allocation5 + $0x1a0] sm:$0xff] }
  0x40   : > { %v2804_v19 = vmul.f32 0.09090909, %v459_v14  ;;  %v460_v27 = vmul.f32 %v2736_v25, %v427_v20  ;;  %v2411_v31 = vpop.eup %2410  ;;  %v429_v33 = vmul.f32 0.6931472, %v2409_v29  ;;  %1209 = vmatpush.msra.mxu3 %v1000_v56  ;;  %v932_v8 = vld [vmem:[#allocation5 + $0x1b0] sm:$0xff]  ;;  %v894_v14 = vld [vmem:[#allocation5 + $0x80] sm:$0xff] }
  0x41   : > { %v2807_v22 = vmul.f32 0.09090909, %v467_v17  ;;  %v468_v30 = vmul.f32 %v2736_v25, %v443_v23  ;;  %v445_v35 = vmul.f32 0.6931472, %v2411_v31  ;;  %v2413_v39 = vpop.eup %2412  ;;  %1014 = vmatpush.msrb.mxu0 %v904_v1  ;;  %1080 = vmatpush.msrb.mxu1 %v934_v4  ;;  %v994_v16 = vld [vmem:[#allocation5 + $0x3a0] sm:$0xff]  ;;  %v892_v17 = vld [vmem:[#allocation5 + $0x70] sm:$0xff] }
  0x42   : > { %2231 = vmatmul.msk.f32.gmra.mxu0 %vm505_vm1, %v2756_v47  ;;  %2247 = vmatmul.msk.f32.gmra.mxu1 %vm505_vm1, %v2756_v47  ;;  %v2820_v32 = vmul.f32 0.09090909, %v460_v27  ;;  %v461_v36 = vmul.f32 %v2736_v25, %v429_v33  ;;  %v2415_v43 = vpop.eup %2414  ;;  %v431_v45 = vmul.f32 0.6931472, %v2413_v39  ;;  %v924_v18 = vld [vmem:[#allocation5 + $0x170] sm:$0xff]  ;;  %v890_v20 = vld [vmem:[#allocation5 + $0x60] sm:$0xff] }
  0x43   : > { %2239 = vmatmul.msk.f32.gmra.mxu2 %vm505_vm1, %v2759_v50  ;;  %2255 = vmatmul.msk.f32.gmra.mxu3 %vm505_vm1, %v2759_v50  ;;  %v2822_v34 = vmul.f32 0.09090909, %v468_v30  ;;  %v469_v40 = vmul.f32 %v2736_v25, %v445_v35  ;;  %v447_v48 = vmul.f32 0.6931472, %v2415_v43  ;;  %v888_v23 = vld [vmem:[#allocation5 + $0x50] sm:$0xff]  ;;  %v886_v26 = vld [vmem:[#allocation5 + $0x40] sm:$0xff] }
  0x44   : > { %v2834_v44 = vmul.f32 0.09090909, %v461_v36  ;;  %v462_v49 = vmul.f32 %v2736_v25, %v431_v45  ;;  %1210 = vmatpush.msra.mxu3 %v998_v58  ;;  %1015 = vmatpush.msrb.mxu0 %v902_v3  ;;  %v918_v27 = vld [vmem:[#allocation5 + $0x140] sm:$0xff]  ;;  %v992_v28 = vld [vmem:[#allocation5 + $0x390] sm:$0xff] }
  0x45   : > { %v2836_v46 = vmul.f32 0.09090909, %v469_v40  ;;  %v470_v51 = vmul.f32 %v2736_v25, %v447_v48  ;;  %v968_v25 = vld [vmem:[#allocation5 + $0x2d0] sm:$0xff]  ;;  %1081 = vmatpush.msrb.mxu1 %v932_v8  ;;  %v882_v31 = vld [vmem:[#allocation5 + $0x20] sm:$0xff] }
  0x46   : > { %v2848_v54 = vmul.f32 0.09090909, %v462_v49  ;;  %1144 = vmatpush.msra.mxu2 %v968_v25  ;;  %1211 = vmatpush.msra.mxu3 %v996_v5  ;;  %v884_v29 = vld [vmem:[#allocation5 + $0x30] sm:$0xff]  ;;  %v914_v33 = vld [vmem:[#allocation5 + $0x120] sm:$0xff] }
  0x47   : > { %v2850_v55 = vmul.f32 0.09090909, %v470_v51  ;;  %1016 = vmatpush.msrb.mxu0 %v900_v6  ;;  %1082 = vmatpush.msrb.mxu1 %v930_v11  ;;  %v916_v30 = vld [vmem:[#allocation5 + $0x130] sm:$0xff]  ;;  %v878_v39 = vld [vmem:[#allocation5] sm:$0xff] }
  0x48   : > { %1145 = vmatpush.msra.mxu2 %v966_v57  ;;  %1212 = vmatpush.msra.mxu3 %v994_v16  ;;  %v880_v35 = vld [vmem:[#allocation5 + $0x10] sm:$0xff]  ;;  %v910_v40 = vld [vmem:[#allocation5 + $0x100] sm:$0xff] }
  0x49   : > { %1017 = vmatpush.msrb.mxu0 %v898_v9  ;;  %1083 = vmatpush.msrb.mxu1 %v928_v13  ;;  %v912_v36 = vld [vmem:[#allocation5 + $0x110] sm:$0xff]  ;;  %v990_v41 = vld [vmem:[#allocation5 + $0x380] sm:$0xff] }
  0x4a   : > { %2232 = vmatmul.msk.f32.gmra.mxu0 %vm505_vm1, %v2772_v59  ;;  %2248 = vmatmul.msk.f32.gmra.mxu1 %vm505_vm1, %v2772_v59  ;;  %v956_v42 = vld [vmem:[#allocation5 + $0x270] sm:$0xff]  ;;  %v986_v45 = vld [vmem:[#allocation5 + $0x360] sm:$0xff] }
  0x4b   : > { %2240 = vmatmul.msk.f32.gmra.mxu2 %vm505_vm1, %v2775_v62  ;;  %2256 = vmatmul.msk.f32.gmra.mxu3 %vm505_vm1, %v2775_v62  ;;  %v988_v43 = vld [vmem:[#allocation5 + $0x370] sm:$0xff]  ;;  %v2891_v48 = vld [vmem:[%s4109_s2] sm:$0xf] }
  0x4c   : > { %1018 = vmatpush.msrb.mxu0 %v896_v12  ;;  %1084 = vmatpush.msrb.mxu1 %v926_v15  ;;  %v2898_v49 = vperm.slane %v2891_v48, 0  ;;  %v984_v51 = vld [vmem:[#allocation5 + $0x350] sm:$0xff]  ;;  %v950_v58 = vld [vmem:[#allocation5 + $0x240] sm:$0xff] }
  0x4d   : > { %1213 = vmatpush.msra.mxu3 %v992_v28  ;;  %v982_v60 = vld [vmem:[#allocation5 + $0x340] sm:$0xff]  ;;  %v948_v4 = vld [vmem:[#allocation5 + $0x230] sm:$0xff] }
  0x4e   : > { %1019 = vmatpush.msrb.mxu0 %v894_v14  ;;  %1085 = vmatpush.msrb.mxu1 %v924_v18  ;;  %v980_v5 = vld [vmem:[#allocation5 + $0x330] sm:$0xff]  ;;  %v946_v14 = vld [vmem:[#allocation5 + $0x220] sm:$0xff] }
  0x4f   : > { %1214 = vmatpush.msra.mxu3 %v990_v41  ;;  %v978_v15 = vld [vmem:[#allocation5 + $0x320] sm:$0xff] }
  0x50   : > { %1020 = vmatpush.msrb.mxu0 %v892_v17  ;;  %1086 = vmatpush.msrb.mxu1 %v922_v21 }
  0x51   : > { %1215 = vmatpush.msra.mxu3 %v988_v43 }
  0x52   : > { %2233 = vmatmul.msk.f32.gmra.mxu0 %vm505_vm1, %v2788_v7  ;;  %2249 = vmatmul.msk.f32.gmra.mxu1 %vm505_vm1, %v2788_v7 }
  0x53   : > { %2241 = vmatmul.msk.f32.gmra.mxu2 %vm505_vm1, %v2791_v10  ;;  %2257 = vmatmul.msk.f32.gmra.mxu3 %vm505_vm1, %v2791_v10 }
  0x54   : > { %1021 = vmatpush.msrb.mxu0 %v890_v20  ;;  %1087 = vmatpush.msrb.mxu1 %v920_v24 }
  0x55   : > { %1216 = vmatpush.msra.mxu3 %v986_v45 }
  0x56   : > { %1022 = vmatpush.msrb.mxu0 %v888_v23  ;;  %1088 = vmatpush.msrb.mxu1 %v918_v27 }
  0x57   : > { %1217 = vmatpush.msra.mxu3 %v984_v51  ;;  %v909_v51 = vld [vmem:[#allocation5 + $0xf8] sm:$0xff] }
  0x58   : > { %1023 = vmatpush.msrb.mxu0 %v886_v26  ;;  %1089 = vmatpush.msrb.mxu1 %v916_v30  ;;  %v976_v26 = vld [vmem:[#allocation5 + $0x310] sm:$0xff] }
  0x59   : > { %1218 = vmatpush.msra.mxu3 %v982_v60 }
  0x5a   : > { %2234 = vmatmul.msk.f32.gmra.mxu0 %vm505_vm1, %v2804_v19  ;;  %2250 = vmatmul.msk.f32.gmra.mxu1 %vm505_vm1, %v2804_v19 }
  0x5b   : > { %2242 = vmatmul.msk.f32.gmra.mxu2 %vm505_vm1, %v2807_v22  ;;  %2258 = vmatmul.msk.f32.gmra.mxu3 %vm505_vm1, %v2807_v22 }
  0x5c   : > { %1024 = vmatpush.msrb.mxu0 %v884_v29  ;;  %1090 = vmatpush.msrb.mxu1 %v914_v33 }
  0x5d   : > { %1219 = vmatpush.msra.mxu3 %v980_v5 }
  0x5e   : > { %1025 = vmatpush.msrb.mxu0 %v882_v31  ;;  %1091 = vmatpush.msrb.mxu1 %v912_v36  ;;  %v942_v31 = vld [vmem:[#allocation5 + $0x200] sm:$0xff] }
  0x5f   : > { %1220 = vmatpush.msra.mxu3 %v978_v15  ;;  %v1003_v15 = vld [vmem:[#allocation5 + $0x3e8] sm:$0xff] }
  0x60   : > { %1026 = vmatpush.msrb.mxu0 %v880_v35  ;;  %1092 = vmatpush.msrb.mxu1 %v910_v40 }
  0x61   : > { %1221 = vmatpush.msra.mxu3 %v976_v26 }
  0x62   : > { %2235 = vmatmul.msk.f32.gmra.mxu0 %vm505_vm1, %v2820_v32  ;;  %2251 = vmatmul.msk.f32.gmra.mxu1 %vm505_vm1, %v2820_v32 }
  0x63   : > { %2243 = vmatmul.msk.f32.gmra.mxu2 %vm505_vm1, %v2822_v34  ;;  %2259 = vmatmul.msk.f32.gmra.mxu3 %vm505_vm1, %v2822_v34 }
  0x64   : > { %1027 = vmatpush.msrb.mxu0 %v878_v39 }
  0x66   : > { %1272 = vmatpush.msra.mxu0 %v909_v51 }
  0x6a   : > { %2236 = vmatmul.msk.f32.gmra.mxu0 %vm505_vm1, %v2834_v44  ;;  %2252 = vmatmul.msk.f32.gmra.mxu1 %vm505_vm1, %v2834_v44 }
  0x6b   : > { %2244 = vmatmul.msk.f32.gmra.mxu2 %vm505_vm1, %v2836_v46  ;;  %2260 = vmatmul.msk.f32.gmra.mxu3 %vm505_vm1, %v2836_v46 }
  0x72   : > { %2237 = vmatmul.msk.f32.gmra.mxu0 %vm505_vm1, %v2848_v54  ;;  %2253 = vmatmul.msk.f32.gmra.mxu1 %vm505_vm1, %v2848_v54 }
  0x73   : > { %2245 = vmatmul.msk.f32.gmra.mxu2 %vm505_vm1, %v2850_v55  ;;  %2261 = vmatmul.msk.f32.gmra.mxu3 %vm505_vm1, %v2850_v55 }
  0x7b   : > { %2262 = vmatmul.msk.f32.vlgmr.msrb.gmra.mxu2 %vm505_vm1, %v2742_v37  ;;  %2278 = vmatmul.msk.f32.vlgmr.msrb.gmra.mxu3 %vm505_vm1, %v2742_v37  ;;  %v964_v37 = vld [vmem:[#allocation5 + $0x2b0] sm:$0xff] }
  0x7c   : > { %1146 = vmatpush.msra.mxu2 %v964_v37 }
  0x83   : > { %2263 = vmatmul.msk.f32.gmra.mxu2 %vm505_vm1, %v2756_v47  ;;  %2279 = vmatmul.msk.f32.gmra.mxu3 %vm505_vm1, %v2756_v47  ;;  %v962_v47 = vld [vmem:[#allocation5 + $0x2a0] sm:$0xff] }
  0x84   : > { %1147 = vmatpush.msra.mxu2 %v962_v47 }
  0x8b   : > { %2264 = vmatmul.msk.f32.gmra.mxu2 %vm505_vm1, %v2772_v59  ;;  %2280 = vmatmul.msk.f32.gmra.mxu3 %vm505_vm1, %v2772_v59  ;;  %v960_v59 = vld [vmem:[#allocation5 + $0x290] sm:$0xff] }
  0x8c   : > { %1148 = vmatpush.msra.mxu2 %v960_v59  ;;  %v944_v59 = vld [vmem:[#allocation5 + $0x210] sm:$0xff] }
  0x93   : > { %2265 = vmatmul.msk.f32.gmra.mxu2 %vm505_vm1, %v2788_v7  ;;  %2281 = vmatmul.msk.f32.gmra.mxu3 %vm505_vm1, %v2788_v7  ;;  %v958_v7 = vld [vmem:[#allocation5 + $0x280] sm:$0xff] }
  0x94   : > { %1149 = vmatpush.msra.mxu2 %v958_v7  ;;  %v974_v7 = vld [vmem:[#allocation5 + $0x300] sm:$0xff] }
  0x95   : > { %1222 = vmatpush.msra.mxu3 %v974_v7 }
  0x96   : > { %1150 = vmatpush.msra.mxu2 %v956_v42 }
  0x9b   : > { %2266 = vmatmul.msk.f32.gmra.mxu2 %vm505_vm1, %v2804_v19  ;;  %2282 = vmatmul.msk.f32.gmra.mxu3 %vm505_vm1, %v2804_v19  ;;  %v954_v19 = vld [vmem:[#allocation5 + $0x260] sm:$0xff] }
  0x9c   : > { %1151 = vmatpush.msra.mxu2 %v954_v19 }
  0xa3   : > { %2267 = vmatmul.msk.f32.gmra.mxu2 %vm505_vm1, %v2820_v32  ;;  %2283 = vmatmul.msk.f32.gmra.mxu3 %vm505_vm1, %v2820_v32  ;;  %v952_v32 = vld [vmem:[#allocation5 + $0x250] sm:$0xff] }
  0xa4   : > { %1152 = vmatpush.msra.mxu2 %v952_v32  ;;  %v973_v32 = vld [vmem:[#allocation5 + $0x2f8] sm:$0xff] }
  0xa6   : > { %1153 = vmatpush.msra.mxu2 %v950_v58 }
  0xa8   : > { %1154 = vmatpush.msra.mxu2 %v948_v4  ;;  %v941_v4 = vld [vmem:[#allocation5 + $0x1f8] sm:$0xff] }
  0xa9   : > { %1337 = vmatpush.msra.mxu1 %v941_v4 }
  0xaa   : > { %1155 = vmatpush.msra.mxu2 %v946_v14  ;;  %v907_v14 = vld [vmem:[#allocation5 + $0xe8] sm:$0xff] }
  0xab   : > { %2268 = vmatmul.msk.f32.gmra.mxu2 %vm505_vm1, %v2834_v44  ;;  %2284 = vmatmul.msk.f32.gmra.mxu3 %vm505_vm1, %v2834_v44  ;;  %v2901_v44 = vperm.slane %v2891_v48, 1 }
  0xac   : > { %1156 = vmatpush.msra.mxu2 %v944_v59  ;;  %1273 = vmatpush.msra.mxu0 %v907_v14  ;;  %v3074_v14 = vperm.slane %v2891_v48, 2 }
  0xae   : > { %1157 = vmatpush.msra.mxu2 %v942_v31 }
  0xb0   : > { %1402 = vmatpush.msrb.mxu2 %v973_v32  ;;  %v1001_v32 = vld [vmem:[#allocation5 + $0x3d8] sm:$0xff] }
  0xb3   : > { %2269 = vmatmul.msk.f32.gmra.mxu2 %vm505_vm1, %v2848_v54  ;;  %2285 = vmatmul.msk.f32.gmra.mxu3 %vm505_vm1, %v2848_v54 }
  0xb7   : > { %v571_v52 = vpop.f32.mrf.mxu0  ;;  %v636_v53 = vpop.f32.mrf.mxu1 }
  0xb8   : > { %v2904_v25 = vadd.f32 %v571_v52, %v2898_v49  ;;  %v2907_v56 = vadd.f32 %v636_v53, %v2901_v44  ;;  %v1005_v52 = vld [vmem:[#allocation5 + $0x3f8] sm:$0xff] }
  0xb9   : > { %1467 = vmatpush.msrb.mxu3 %v1005_v52 }
  0xba   : > { %v814_v54 = vmax.f32 %v2904_v25, 0.0  ;;  %v815_v57 = vmax.f32 %v2907_v56, 0.0  ;;  %v949_v56 = vld [vmem:[#allocation5 + $0x238] sm:$0xff] }
  0xbb   : > { %2270 = vmatmul.msk.f32.gmra.mxu2 %vm505_vm1, %v2744_v38  ;;  %2286 = vmatmul.msk.f32.gmra.mxu3 %vm505_vm1, %v2744_v38 }
  0xbc   : > { %1028 = vmatmul.f32.vlgmr.msrb.gmra.mxu0 %v814_v54  ;;  %1093 = vmatmul.f32.vlgmr.msrb.gmra.mxu1 %v815_v57 }
  0xbd   : > { %1468 = vmatpush.msrb.mxu3 %v1003_v15  ;;  %v967_v15 = vld [vmem:[#allocation5 + $0x2c8] sm:$0xff] }
  0xbe   : > { %v2919_v61 = vpop.f32.mrf.mxu2  ;;  %v2921_v63 = vpop.f32.mrf.mxu3 }
  0xbf   : > { %v574_v0 = vpop.f32.mrf.mxu0  ;;  %v639_v1 = vpop.f32.mrf.mxu1  ;;  %v3061_v51 = vadd.f32 %v2919_v61, %v2898_v49  ;;  %v3065_v52 = vadd.f32 %v2921_v63, %v2901_v44  ;;  %1469 = vmatpush.msrb.mxu3 %v1001_v32  ;;  %v3077_v61 = vperm.slane %v2891_v48, 3  ;;  %v903_v63 = vld [vmem:[#allocation5 + $0xc8] sm:$0xff] }
  0xc0   : > { %v2924_v2 = vadd.f32 %v574_v0, %v2898_v49  ;;  %v2927_v38 = vadd.f32 %v639_v1, %v2901_v44 }
  0xc1   : > { %v4121_v4 = vmax.f32 %v3061_v51, 0.0 }
  0xc2   : > { %v818_v37 = vmax.f32 %v2924_v2, 0.0  ;;  %v819_v3 = vmax.f32 %v2927_v38, 0.0 }
  0xc3   : > { %2271 = vmatmul.msk.f32.gmra.mxu2 %vm505_vm1, %v2759_v50  ;;  %2287 = vmatmul.msk.f32.gmra.mxu3 %vm505_vm1, %v2759_v50 }
  0xc4   : > { %1031 = vmatmul.f32.gmra.mxu0 %v818_v37  ;;  %1096 = vmatmul.f32.gmra.mxu1 %v819_v3 }
  0xc6   : > { %v2939_v6 = vpop.f32.mrf.mxu2  ;;  %v2941_v8 = vpop.f32.mrf.mxu3 }
  0xc7   : > { %v577_v9 = vpop.f32.mrf.mxu0  ;;  %v642_v11 = vpop.f32.mrf.mxu1 }
  0xc8   : > { %v2944_v12 = vadd.f32 %v577_v9, %v2898_v49  ;;  %v2947_v50 = vadd.f32 %v642_v11, %v2901_v44  ;;  %v971_v11 = vld [vmem:[#allocation5 + $0x2e8] sm:$0xff] }
  0xc9   : > { %1403 = vmatpush.msrb.mxu2 %v971_v11  ;;  %v4118_v11 = vmax.f32 %v3065_v52, 0.0 }
  0xca   : > { %v822_v13 = vmax.f32 %v2944_v12, 0.0  ;;  %v823_v47 = vmax.f32 %v2947_v50, 0.0 }
  0xcb   : > { %2272 = vmatmul.msk.f32.gmra.mxu2 %vm505_vm1, %v2775_v62  ;;  %2288 = vmatmul.msk.f32.gmra.mxu3 %vm505_vm1, %v2775_v62 }
  0xcc   : > { %1034 = vmatmul.f32.gmra.mxu0 %v822_v13  ;;  %1099 = vmatmul.f32.gmra.mxu1 %v823_v47 }
  0xce   : > { %v2959_v16 = vpop.f32.mrf.mxu2  ;;  %v2961_v17 = vpop.f32.mrf.mxu3 }
  0xcf   : > { %v580_v18 = vpop.f32.mrf.mxu0  ;;  %v645_v20 = vpop.f32.mrf.mxu1 }
  0xd0   : > { %v2964_v21 = vadd.f32 %v580_v18, %v2898_v49  ;;  %v2967_v62 = vadd.f32 %v645_v20, %v2901_v44 }
  0xd2   : > { %v4155_v23 = vmax.f32 %v2964_v21, 0.0  ;;  %v4143_v24 = vmax.f32 %v2967_v62, 0.0 }
  0xd3   : > { %2273 = vmatmul.msk.f32.gmra.mxu2 %vm505_vm1, %v2791_v10  ;;  %2289 = vmatmul.msk.f32.gmra.mxu3 %vm505_vm1, %v2791_v10 }
  0xd4   : > { %1037 = vmatmul.f32.gmra.mxu0 %v4155_v23  ;;  %1102 = vmatmul.f32.gmra.mxu1 %v4143_v24  ;;  %v911_v24 = vld [vmem:[#allocation5 + $0x108] sm:$0xff] }
  0xd6   : > { %v2979_v27 = vpop.f32.mrf.mxu2  ;;  %v2981_v28 = vpop.f32.mrf.mxu3 }
  0xd7   : > { %v583_v29 = vpop.f32.mrf.mxu0  ;;  %v648_v30 = vpop.f32.mrf.mxu1 }
  0xd8   : > { %v2984_v33 = vadd.f32 %v583_v29, %v2898_v49  ;;  %v2987_v10 = vadd.f32 %v648_v30, %v2901_v44  ;;  %v939_v30 = vld [vmem:[#allocation5 + $0x1e8] sm:$0xff] }
  0xd9   : > { %1338 = vmatpush.msra.mxu1 %v939_v30  ;;  %v3089_v30 = vadd.f32 %v2941_v8, %v2901_v44  ;;  %v965_v8 = vld [vmem:[#allocation5 + $0x2b8] sm:$0xff] }
  0xda   : > { %v4139_v35 = vmax.f32 %v2984_v33, 0.0  ;;  %v4137_v36 = vmax.f32 %v2987_v10, 0.0 }
  0xdb   : > { %2274 = vmatmul.msk.f32.gmra.mxu2 %vm505_vm1, %v2807_v22  ;;  %2290 = vmatmul.msk.f32.gmra.mxu3 %vm505_vm1, %v2807_v22 }
  0xdc   : > { %1040 = vmatmul.f32.gmra.mxu0 %v4139_v35  ;;  %1105 = vmatmul.f32.gmra.mxu1 %v4137_v36  ;;  %v917_v36 = vld [vmem:[#allocation5 + $0x138] sm:$0xff]  ;;  %v915_v35 = vld [vmem:[#allocation5 + $0x128] sm:$0xff] }
  0xde   : > { %v2999_v39 = vpop.f32.mrf.mxu2  ;;  %v3001_v40 = vpop.f32.mrf.mxu3 }
  0xdf   : > { %v586_v41 = vpop.f32.mrf.mxu0  ;;  %v651_v42 = vpop.f32.mrf.mxu1 }
  0xe0   : > { %v3004_v43 = vadd.f32 %v586_v41, %v2898_v49  ;;  %v3007_v19 = vadd.f32 %v651_v42, %v2901_v44  ;;  %v969_v41 = vld [vmem:[#allocation5 + $0x2d8] sm:$0xff] }
  0xe1   : > { %v905_v42 = vld [vmem:[#allocation5 + $0xd8] sm:$0xff]  ;;  %1404 = vmatpush.msrb.mxu2 %v969_v41 }
  0xe2   : > { %v4135_v22 = vmax.f32 %v3004_v43, 0.0  ;;  %v4132_v45 = vmax.f32 %v3007_v19, 0.0  ;;  %1274 = vmatpush.msra.mxu0 %v905_v42 }
  0xe3   : > { %2275 = vmatmul.msk.f32.gmra.mxu2 %vm505_vm1, %v2822_v34  ;;  %2291 = vmatmul.msk.f32.gmra.mxu3 %vm505_vm1, %v2822_v34 }
  0xe4   : > { %1043 = vmatmul.f32.gmra.mxu0 %v4135_v22  ;;  %1108 = vmatmul.f32.gmra.mxu1 %v4132_v45 }
  0xe5   : > { %1405 = vmatpush.msrb.mxu2 %v967_v15  ;;  %1275 = vmatpush.msra.mxu0 %v903_v63  ;;  %v935_v63 = vld [vmem:[#allocation5 + $0x1c8] sm:$0xff] }
  0xe6   : > { %v3019_v53 = vpop.f32.mrf.mxu2  ;;  %v3021_v58 = vpop.f32.mrf.mxu3 }
  0xe7   : > { %v589_v60 = vpop.f32.mrf.mxu0  ;;  %v654_v0 = vpop.f32.mrf.mxu1  ;;  %1406 = vmatpush.msrb.mxu2 %v965_v8  ;;  %v899_v8 = vld [vmem:[#allocation5 + $0xa8] sm:$0xff] }
  0xe8   : > { %v3024_v34 = vadd.f32 %v589_v60, %v2898_v49  ;;  %v3027_v1 = vadd.f32 %v654_v0, %v2901_v44  ;;  %v937_v0 = vld [vmem:[#allocation5 + $0x1d8] sm:$0xff] }
  0xe9   : > { %1339 = vmatpush.msra.mxu1 %v937_v0 }
  0xea   : > { %v4129_v5 = vmax.f32 %v3024_v34, 0.0  ;;  %v4126_v9 = vmax.f32 %v3027_v1, 0.0 }
  0xeb   : > { %2276 = vmatmul.msk.f32.gmra.mxu2 %vm505_vm1, %v2836_v46  ;;  %2292 = vmatmul.msk.f32.gmra.mxu3 %vm505_vm1, %v2836_v46 }
  0xec   : > { %1046 = vmatmul.f32.gmra.mxu0 %v4129_v5  ;;  %1111 = vmatmul.f32.gmra.mxu1 %v4126_v9 }
  0xed   : > { %1340 = vmatpush.msra.mxu1 %v935_v63  ;;  %v3111_v63 = vadd.f32 %v2959_v16, %v2898_v49 }
  0xee   : > { %v3039_v18 = vpop.f32.mrf.mxu2  ;;  %v3041_v20 = vpop.f32.mrf.mxu3 }
  0xef   : > { %v592_v59 = vpop.f32.mrf.mxu0  ;;  %v657_v26 = vpop.f32.mrf.mxu1  ;;  %v4130_v9 = vmax.f32 %v3111_v63, 0.0 }
  0xf0   : > { %v3044_v46 = vadd.f32 %v592_v59, %v2898_v49  ;;  %v3047_v29 = vadd.f32 %v657_v26, %v2901_v44  ;;  %v999_v59 = vld [vmem:[#allocation5 + $0x3c8] sm:$0xff]  ;;  %v3085_v26 = vadd.f32 %v2939_v6, %v2898_v49 }
  0xf1   : > { %1470 = vmatpush.msrb.mxu3 %v999_v59  ;;  %v901_v59 = vld [vmem:[#allocation5 + $0xb8] sm:$0xff] }
  0xf2   : > { %v4125_v31 = vmax.f32 %v3044_v46, 0.0  ;;  %v4124_v7 = vmax.f32 %v3047_v29, 0.0  ;;  %v4122_v6 = vmax.f32 %v3085_v26, 0.0  ;;  %1276 = vmatpush.msra.mxu0 %v901_v59  ;;  %v931_v59 = vld [vmem:[#allocation5 + $0x1a8] sm:$0xff] }
  0xf3   : > { %2277 = vmatmul.msk.f32.gmra.mxu2 %vm505_vm1, %v2850_v55  ;;  %2293 = vmatmul.msk.f32.gmra.mxu3 %vm505_vm1, %v2850_v55 }
  0xf4   : > { %1049 = vmatmul.f32.gmra.mxu0 %v4125_v31  ;;  %1114 = vmatmul.f32.gmra.mxu1 %v4124_v7  ;;  %v929_v31 = vld [vmem:[#allocation5 + $0x198] sm:$0xff] }
  0xf5   : > { %1277 = vmatpush.msra.mxu0 %v899_v8  ;;  %v995_v8 = vld [vmem:[#allocation5 + $0x3a8] sm:$0xff] }
  0xf6   : > { %v3067_v55 = vpop.f32.mrf.mxu2  ;;  %v3069_v60 = vpop.f32.mrf.mxu3 }
  0xfc   : > { %1052 = vmatmul.f32.gmra.mxu0 %v4121_v4  ;;  %1117 = vmatmul.f32.gmra.mxu1 %v4118_v11  ;;  %v4123_v11 = vmax.f32 %v3089_v30, 0.0 }
  0xfe   : > { %v701_v48 = vpop.f32.mrf.mxu2  ;;  %v766_v41 = vpop.f32.mrf.mxu3 }
  0xff   : > { %v3092_v42 = vadd.f32 %v701_v48, %v3074_v14  ;;  %v3095_v32 = vadd.f32 %v766_v41, %v3077_v61  ;;  %v997_v48 = vld [vmem:[#allocation5 + $0x3b8] sm:$0xff] }
 0x100   : > { %v933_v41 = vld [vmem:[#allocation5 + $0x1b8] sm:$0xff]  ;;  %1471 = vmatpush.msrb.mxu3 %v997_v48 }
 0x101   : > { %v4119_v0 = vmax.f32 %v3092_v42, 0.0  ;;  %v4120_v15 = vmax.f32 %v3095_v32, 0.0  ;;  %1341 = vmatpush.msra.mxu1 %v933_v41  ;;  %v927_v41 = vld [vmem:[#allocation5 + $0x188] sm:$0xff] }
 0x102   : > { %1472 = vmatpush.msrb.mxu3 %v995_v8  ;;  %v889_v8 = vld [vmem:[#allocation5 + $0x58] sm:$0xff] }
 0x103   : > { %1158 = vmatmul.f32.vlgmr.msra.gmra.mxu2 %v4119_v0  ;;  %1223 = vmatmul.f32.vlgmr.msra.gmra.mxu3 %v4120_v15  ;;  %v3115_v0 = vadd.f32 %v2961_v17, %v2901_v44  ;;  %v897_v17 = vld [vmem:[#allocation5 + $0x98] sm:$0xff] }
 0x104   : > { %1055 = vmatmul.f32.gmra.mxu0 %v4122_v6  ;;  %1120 = vmatmul.f32.gmra.mxu1 %v4123_v11 }
 0x105   : > { %1342 = vmatpush.msra.mxu1 %v931_v59  ;;  %v4131_v48 = vmax.f32 %v3115_v0, 0.0  ;;  %1278 = vmatpush.msra.mxu0 %v897_v17  ;;  %v893_v59 = vld [vmem:[#allocation5 + $0x78] sm:$0xff]  ;;  %v3137_v17 = vadd.f32 %v2979_v27, %v2898_v49 }
 0x106   : > { %v704_v15 = vpop.f32.mrf.mxu2  ;;  %v769_v4 = vpop.f32.mrf.mxu3 }
 0x107   : > { %v3118_v6 = vadd.f32 %v704_v15, %v3074_v14  ;;  %v3121_v11 = vadd.f32 %v769_v4, %v3077_v61  ;;  %1343 = vmatpush.msra.mxu1 %v929_v31  ;;  %v963_v4 = vld [vmem:[#allocation5 + $0x2a8] sm:$0xff]  ;;  %v925_v31 = vld [vmem:[#allocation5 + $0x178] sm:$0xff] }
 0x108   : > { %v895_v15 = vld [vmem:[#allocation5 + $0x88] sm:$0xff]  ;;  %1407 = vmatpush.msrb.mxu2 %v963_v4 }
 0x109   : > { %v4128_v16 = vmax.f32 %v3118_v6, 0.0  ;;  %v4127_v7 = vmax.f32 %v3121_v11, 0.0  ;;  %1279 = vmatpush.msra.mxu0 %v895_v15  ;;  %1344 = vmatpush.msra.mxu1 %v927_v41  ;;  %v891_v15 = vld [vmem:[#allocation5 + $0x68] sm:$0xff] }
 0x10b   : > { %1161 = vmatmul.f32.gmra.mxu2 %v4128_v16  ;;  %1226 = vmatmul.f32.gmra.mxu3 %v4127_v7  ;;  %v3141_v7 = vadd.f32 %v2981_v28, %v2901_v44  ;;  %v4136_v28 = vmax.f32 %v3137_v17, 0.0 }
 0x10c   : > { %1058 = vmatmul.f32.gmra.mxu0 %v4130_v9  ;;  %1123 = vmatmul.f32.gmra.mxu1 %v4131_v48  ;;  %v923_v48 = vld [vmem:[#allocation5 + $0x168] sm:$0xff] }
 0x10d   : > { %1280 = vmatpush.msra.mxu0 %v893_v59  ;;  %1345 = vmatpush.msra.mxu1 %v925_v31  ;;  %v4138_v41 = vmax.f32 %v3141_v7, 0.0  ;;  %v887_v59 = vld [vmem:[#allocation5 + $0x48] sm:$0xff] }
 0x10e   : > { %v707_v16 = vpop.f32.mrf.mxu2  ;;  %v772_v5 = vpop.f32.mrf.mxu3  ;;  %v919_v31 = vld [vmem:[#allocation5 + $0x148] sm:$0xff] }
 0x10f   : > { %v3144_v9 = vadd.f32 %v707_v16, %v3074_v14  ;;  %v3147_v4 = vadd.f32 %v772_v5, %v3077_v61  ;;  %1281 = vmatpush.msra.mxu0 %v891_v15  ;;  %1346 = vmatpush.msra.mxu1 %v923_v48  ;;  %v921_v16 = vld [vmem:[#allocation5 + $0x158] sm:$0xff]  ;;  %v3163_v48 = vadd.f32 %v2999_v39, %v2898_v49 }
 0x110   : > { %v961_v5 = vld [vmem:[#allocation5 + $0x298] sm:$0xff] }
 0x111   : > { %v4133_v27 = vmax.f32 %v3144_v9, 0.0  ;;  %v4134_v45 = vmax.f32 %v3147_v4, 0.0  ;;  %v993_v15 = vld [vmem:[#allocation5 + $0x398] sm:$0xff]  ;;  %1282 = vmatpush.msra.mxu0 %v889_v8  ;;  %1347 = vmatpush.msra.mxu1 %v921_v16 }
 0x112   : > { %1408 = vmatpush.msrb.mxu2 %v961_v5  ;;  %1473 = vmatpush.msrb.mxu3 %v993_v15  ;;  %v883_v15 = vld [vmem:[#allocation5 + $0x28] sm:$0xff] }
 0x113   : > { %1164 = vmatmul.f32.gmra.mxu2 %v4133_v27  ;;  %1229 = vmatmul.f32.gmra.mxu3 %v4134_v45  ;;  %v3167_v27 = vadd.f32 %v3001_v40, %v2901_v44  ;;  %v4142_v40 = vmax.f32 %v3163_v48, 0.0 }
 0x114   : > { %1061 = vmatmul.f32.gmra.mxu0 %v4136_v28  ;;  %1126 = vmatmul.f32.gmra.mxu1 %v4138_v41  ;;  %v885_v28 = vld [vmem:[#allocation5 + $0x38] sm:$0xff] }
 0x115   : > { %1283 = vmatpush.msra.mxu0 %v887_v59  ;;  %1348 = vmatpush.msra.mxu1 %v919_v31  ;;  %v4144_v5 = vmax.f32 %v3167_v27, 0.0  ;;  %v3189_v59 = vadd.f32 %v3019_v53, %v2898_v49  ;;  %v3193_v31 = vadd.f32 %v3021_v58, %v2901_v44 }
 0x116   : > { %v710_v45 = vpop.f32.mrf.mxu2  ;;  %v775_v22 = vpop.f32.mrf.mxu3 }
 0x117   : > { %v3170_v41 = vadd.f32 %v710_v45, %v3074_v14  ;;  %v3173_v8 = vadd.f32 %v775_v22, %v3077_v61  ;;  %1284 = vmatpush.msra.mxu0 %v885_v28  ;;  %1349 = vmatpush.msra.mxu1 %v917_v36  ;;  %v881_v22 = vld [vmem:[#allocation5 + $0x18] sm:$0xff]  ;;  %v959_v45 = vld [vmem:[#allocation5 + $0x288] sm:$0xff]  ;;  %v4145_v58 = vmax.f32 %v3189_v59, 0.0 }
 0x118   : > { %v913_v36 = vld [vmem:[#allocation5 + $0x118] sm:$0xff]  ;;  %v991_v28 = vld [vmem:[#allocation5 + $0x388] sm:$0xff]  ;;  %1409 = vmatpush.msrb.mxu2 %v959_v45  ;;  %v4146_v45 = vmax.f32 %v3193_v31, 0.0 }
 0x119   : > { %v4141_v39 = vmax.f32 %v3170_v41, 0.0  ;;  %v4140_v16 = vmax.f32 %v3173_v8, 0.0  ;;  %1285 = vmatpush.msra.mxu0 %v883_v15  ;;  %1350 = vmatpush.msra.mxu1 %v915_v35 }
 0x11a   : > { %1474 = vmatpush.msrb.mxu3 %v991_v28 }
 0x11b   : > { %1167 = vmatmul.f32.gmra.mxu2 %v4141_v39  ;;  %1232 = vmatmul.f32.gmra.mxu3 %v4140_v16 }
 0x11c   : > { %1064 = vmatmul.f32.gmra.mxu0 %v4142_v40  ;;  %1129 = vmatmul.f32.gmra.mxu1 %v4144_v5  ;;  %v879_v40 = vld [vmem:[#allocation5 + $0x8] sm:$0xff] }
 0x11d   : > { %1286 = vmatpush.msra.mxu0 %v881_v22  ;;  %1351 = vmatpush.msra.mxu1 %v913_v36 }
 0x11e   : > { %v713_v16 = vpop.f32.mrf.mxu2  ;;  %v778_v39 = vpop.f32.mrf.mxu3 }
 0x11f   : > { %v3196_v5 = vadd.f32 %v713_v16, %v3074_v14  ;;  %v3199_v15 = vadd.f32 %v778_v39, %v3077_v61  ;;  %1287 = vmatpush.msra.mxu0 %v879_v40  ;;  %1352 = vmatpush.msra.mxu1 %v911_v24  ;;  %v957_v39 = vld [vmem:[#allocation5 + $0x278] sm:$0xff]  ;;  %v3215_v24 = vadd.f32 %v3039_v18, %v2898_v49 }
 0x120   : > { %v989_v16 = vld [vmem:[#allocation5 + $0x378] sm:$0xff]  ;;  %1410 = vmatpush.msrb.mxu2 %v957_v39  ;;  %v3219_v40 = vadd.f32 %v3041_v20, %v2901_v44  ;;  %v955_v20 = vld [vmem:[#allocation5 + $0x268] sm:$0xff] }
 0x121   : > { %v4150_v35 = vmax.f32 %v3196_v5, 0.0  ;;  %v4148_v53 = vmax.f32 %v3199_v15, 0.0  ;;  %1475 = vmatpush.msrb.mxu3 %v989_v16  ;;  %v4151_v16 = vmax.f32 %v3215_v24, 0.0 }
 0x122   : > { %v4152_v18 = vmax.f32 %v3219_v40, 0.0  ;;  %1411 = vmatpush.msrb.mxu2 %v955_v20 }
 0x123   : > { %1170 = vmatmul.f32.gmra.mxu2 %v4150_v35  ;;  %1235 = vmatmul.f32.gmra.mxu3 %v4148_v53 }
 0x124   : > { %1067 = vmatmul.f32.gmra.mxu0 %v4145_v58  ;;  %1132 = vmatmul.f32.gmra.mxu1 %v4146_v45 }
 0x126   : > { %v716_v22 = vpop.f32.mrf.mxu2  ;;  %v781_v36 = vpop.f32.mrf.mxu3 }
 0x127   : > { %v3222_v28 = vadd.f32 %v716_v22, %v3074_v14  ;;  %v3225_v58 = vadd.f32 %v781_v36, %v3077_v61  ;;  %v987_v22 = vld [vmem:[#allocation5 + $0x368] sm:$0xff]  ;;  %v3241_v36 = vadd.f32 %v3067_v55, %v2898_v49  ;;  %v985_v55 = vld [vmem:[#allocation5 + $0x358] sm:$0xff] }
 0x128   : > { %1476 = vmatpush.msrb.mxu3 %v987_v22 }
 0x129   : > { %v4147_v45 = vmax.f32 %v3222_v28, 0.0  ;;  %v4149_v39 = vmax.f32 %v3225_v58, 0.0  ;;  %v4156_v22 = vmax.f32 %v3241_v36, 0.0 }
 0x12a   : > { %1477 = vmatpush.msrb.mxu3 %v985_v55  ;;  %v983_v55 = vld [vmem:[#allocation5 + $0x348] sm:$0xff] }
 0x12b   : > { %1173 = vmatmul.f32.gmra.mxu2 %v4147_v45  ;;  %1238 = vmatmul.f32.gmra.mxu3 %v4149_v39  ;;  %v3245_v45 = vadd.f32 %v3069_v60, %v2901_v44  ;;  %v953_v44 = vld [vmem:[#allocation5 + $0x258] sm:$0xff] }
 0x12c   : > { %1070 = vmatmul.f32.gmra.mxu0 %v4151_v16  ;;  %1135 = vmatmul.f32.gmra.mxu1 %v4152_v18 }
 0x12d   : > { %v4157_v49 = vmax.f32 %v3245_v45, 0.0  ;;  %1412 = vmatpush.msrb.mxu2 %v953_v44  ;;  %v951_v44 = vld [vmem:[#allocation5 + $0x248] sm:$0xff]  ;;  %1478 = vmatpush.msrb.mxu3 %v983_v55 }
 0x12e   : > { %v719_v53 = vpop.f32.mrf.mxu2  ;;  %v784_v39 = vpop.f32.mrf.mxu3 }
 0x12f   : > { %v3248_v35 = vadd.f32 %v719_v53, %v3074_v14  ;;  %v3251_v16 = vadd.f32 %v784_v39, %v3077_v61  ;;  %1413 = vmatpush.msrb.mxu2 %v951_v44 }
 0x131   : > { %v4153_v18 = vmax.f32 %v3248_v35, 0.0  ;;  %v4154_v20 = vmax.f32 %v3251_v16, 0.0  ;;  %1414 = vmatpush.msrb.mxu2 %v949_v56  ;;  %v979_v56 = vld [vmem:[#allocation5 + $0x328] sm:$0xff] }
 0x133   : > { %1176 = vmatmul.f32.gmra.mxu2 %v4153_v18  ;;  %1241 = vmatmul.f32.gmra.mxu3 %v4154_v20 }
 0x134   : > { %1073 = vmatmul.f32.gmra.mxu0 %v4156_v22  ;;  %1138 = vmatmul.f32.gmra.mxu1 %v4157_v49 }
 0x136   : > { %v722_v60 = vpop.f32.mrf.mxu2  ;;  %v787_v53 = vpop.f32.mrf.mxu3 }
 0x137   : > { %v3266_v39 = vadd.f32 %v722_v60, %v3074_v14  ;;  %v3269_v18 = vadd.f32 %v787_v53, %v3077_v61 }
 0x139   : > { %v4158_v20 = vmax.f32 %v3266_v39, 0.0  ;;  %v4159_v23 = vmax.f32 %v3269_v18, 0.0  ;;  %v3273_v22 = vpop.f32.mrf.mxu0  ;;  %v3301_v44 = vpop.f32.mrf.mxu1 }
 0x13b   : > { %1179 = vmatmul.f32.gmra.mxu2 %v4158_v20  ;;  %1244 = vmatmul.f32.gmra.mxu3 %v4159_v23 }
 0x13c   : > { %1288 = vmatmul.f32.vlgmr.msra.gmra.mxu0 %v814_v54  ;;  %1353 = vmatmul.f32.vlgmr.msra.gmra.mxu1 %v815_v57  ;;  %v981_v57 = vld [vmem:[#allocation5 + $0x338] sm:$0xff] }
 0x13d   : > { %1479 = vmatpush.msrb.mxu3 %v981_v57 }
 0x13e   : > { %v725_v60 = vpop.f32.mrf.mxu2  ;;  %v790_v53 = vpop.f32.mrf.mxu3 }
 0x13f   : > { %v3284_v49 = vadd.f32 %v725_v60, %v3074_v14  ;;  %v3287_v20 = vadd.f32 %v790_v53, %v3077_v61  ;;  %1480 = vmatpush.msrb.mxu3 %v979_v56  ;;  %v945_v56 = vld [vmem:[#allocation5 + $0x218] sm:$0xff] }
 0x141   : > { %v4160_v23 = vmax.f32 %v3284_v49, 0.0  ;;  %v4161_v25 = vmax.f32 %v3287_v20, 0.0  ;;  %v3291_v54 = vpop.f32.mrf.mxu0 }
 0x143   : > { %1182 = vmatmul.f32.gmra.mxu2 %v4160_v23  ;;  %1247 = vmatmul.f32.gmra.mxu3 %v4161_v25 }
 0x144   : > { %1291 = vmatmul.f32.gmra.mxu0 %v818_v37  ;;  %1356 = vmatmul.f32.gmra.mxu1 %v819_v3  ;;  %v947_v3 = vld [vmem:[#allocation5 + $0x228] sm:$0xff] }
 0x145   : > { %1415 = vmatpush.msrb.mxu2 %v947_v3  ;;  %v4199_v3 = vmax.f32 %v2967_v62, 0.0 }
 0x146   : > { %v728_v55 = vpop.f32.mrf.mxu2  ;;  %v793_v60 = vpop.f32.mrf.mxu3 }
 0x147   : > { %v3304_v53 = vadd.f32 %v728_v55, %v3074_v14  ;;  %v3307_v23 = vadd.f32 %v793_v60, %v3077_v61  ;;  %v3321_v60 = vpop.f32.mrf.mxu1  ;;  %1416 = vmatpush.msrb.mxu2 %v945_v56  ;;  %v943_v56 = vld [vmem:[#allocation5 + $0x208] sm:$0xff] }
 0x149   : > { %4195 = vst [vmem:[#allocation14_spill] sm:$0xff] %v3307_v23  ;;  %v4162_v2 = vmax.f32 %v3304_v53, 0.0  ;;  %v4163_v37 = vmax.f32 %v3307_v23, 0.0  ;;  %v3311_v38 = vpop.f32.mrf.mxu0  ;;  %1417 = vmatpush.msrb.mxu2 %v943_v56 }
 0x14b   : > { %1185 = vmatmul.f32.gmra.mxu2 %v4162_v2  ;;  %1250 = vmatmul.f32.gmra.mxu3 %v4163_v37 }
 0x14c   : > { %1294 = vmatmul.f32.gmra.mxu0 %v822_v13  ;;  %1359 = vmatmul.f32.gmra.mxu1 %v823_v47  ;;  %v4198_v47 = vmax.f32 %v2964_v21, 0.0 }
 0x14e   : > { %v731_v57 = vpop.f32.mrf.mxu2  ;;  %v796_v55 = vpop.f32.mrf.mxu3 }
 0x14f   : > { %v3324_v25 = vadd.f32 %v731_v57, %v3074_v14  ;;  %v3327_v2 = vadd.f32 %v796_v55, %v3077_v61  ;;  %v977_v57 = vld [vmem:[#allocation5 + $0x318] sm:$0xff] }
 0x150   : > { %1481 = vmatpush.msrb.mxu3 %v977_v57  ;;  %v975_v57 = vld [vmem:[#allocation5 + $0x308] sm:$0xff] }
 0x151   : > { %4196 = vst [vmem:[#allocation15_spill] sm:$0xff] %v3324_v25  ;;  %v4165_v12 = vmax.f32 %v3324_v25, 0.0  ;;  %v4167_v13 = vmax.f32 %v3327_v2, 0.0  ;;  %v3331_v50 = vpop.f32.mrf.mxu0 }
 0x152   : > { %4197 = vst [vmem:[#allocation16_spill] sm:$0xff] %v3327_v2  ;;  %v3347_v2 = vpop.f32.mrf.mxu1  ;;  %1482 = vmatpush.msrb.mxu3 %v975_v57 }
 0x153   : > { %1188 = vmatmul.f32.gmra.mxu2 %v4165_v12  ;;  %1253 = vmatmul.f32.gmra.mxu3 %v4167_v13 }
 0x154   : > { %1297 = vmatmul.f32.gmra.mxu0 %v4198_v47  ;;  %1362 = vmatmul.f32.gmra.mxu1 %v4199_v3  ;;  %v4201_v3 = vmax.f32 %v2984_v33, 0.0 }
 0x156   : > { %v734_v55 = vpop.f32.mrf.mxu2  ;;  %v799_v37 = vpop.f32.mrf.mxu3 }
 0x157   : > { %v3342_v23 = vadd.f32 %v734_v55, %v3074_v14  ;;  %v3345_v12 = vadd.f32 %v799_v37, %v3077_v61  ;;  %v4202_v37 = vmax.f32 %v2987_v10, 0.0 }
 0x159   : > { %4200 = vst [vmem:[#allocation17_spill] sm:$0xff] %v3345_v12  ;;  %v4169_v21 = vmax.f32 %v3342_v23, 0.0  ;;  %v4170_v47 = vmax.f32 %v3345_v12, 0.0  ;;  %v3351_v62 = vpop.f32.mrf.mxu0 }
 0x15a   : > { %v3371_v10 = vpop.f32.mrf.mxu1 }
 0x15b   : > { %1191 = vmatmul.f32.gmra.mxu2 %v4169_v21  ;;  %1256 = vmatmul.f32.gmra.mxu3 %v4170_v47 }
 0x15c   : > { %1300 = vmatmul.f32.gmra.mxu0 %v4201_v3  ;;  %1365 = vmatmul.f32.gmra.mxu1 %v4202_v37  ;;  %v4205_v37 = vmax.f32 %v3004_v43, 0.0  ;;  %v4209_v43 = vmax.f32 %v3024_v34, 0.0 }
 0x15e   : > { %v737_v55 = vpop.f32.mrf.mxu2  ;;  %v802_v13 = vpop.f32.mrf.mxu3 }
 0x15f   : > { %v3362_v25 = vadd.f32 %v737_v55, %v3074_v14  ;;  %v3365_v21 = vadd.f32 %v802_v13, %v3077_v61  ;;  %v4206_v13 = vmax.f32 %v3007_v19, 0.0  ;;  %v4210_v19 = vmax.f32 %v3027_v1, 0.0 }
 0x161   : > { %4203 = vst [vmem:[#allocation18_spill] sm:$0xff] %v3362_v25  ;;  %v4173_v47 = vmax.f32 %v3362_v25, 0.0  ;;  %v4175_v33 = vmax.f32 %v3365_v21, 0.0  ;;  %v3369_v3 = vpop.f32.mrf.mxu0 }
 0x162   : > { %4204 = vst [vmem:[#allocation19_spill] sm:$0xff] %v3365_v21 }
 0x163   : > { %1194 = vmatmul.f32.gmra.mxu2 %v4173_v47  ;;  %1259 = vmatmul.f32.gmra.mxu3 %v4175_v33 }
 0x164   : > { %1303 = vmatmul.f32.gmra.mxu0 %v4205_v37  ;;  %1368 = vmatmul.f32.gmra.mxu1 %v4206_v13  ;;  %v1595_v37 = vld [vmem:[#allocation7 + $0xf8] sm:$0xff] }
 0x165   : > { %v1627_v13 = vld [vmem:[#allocation7 + $0x1f8] sm:$0xff]  ;;  %1764 = vmatpush.msra.mxu2 %v1595_v37  ;;  %v1626_v37 = vld [vmem:[#allocation7 + $0x1f0] sm:$0xff] }
 0x166   : > { %v740_v56 = vpop.f32.mrf.mxu2  ;;  %v805_v57 = vpop.f32.mrf.mxu3  ;;  %1829 = vmatpush.msra.mxu3 %v1627_v13  ;;  %v4213_v13 = vmax.f32 %v3044_v46, 0.0  ;;  %1699 = vmatpush.msrb.mxu1 %v1626_v37 }
 0x167   : > { %v3382_v55 = vadd.f32 %v740_v56, %v3074_v14  ;;  %v3385_v12 = vadd.f32 %v805_v57, %v3077_v61  ;;  %v3399_v56 = vpop.f32.mrf.mxu1 }
 0x169   : > { %4207 = vst [vmem:[#allocation20_spill] sm:$0xff] %v3382_v55  ;;  %v4177_v25 = vmax.f32 %v3382_v55, 0.0  ;;  %v4178_v47 = vmax.f32 %v3385_v12, 0.0  ;;  %v3389_v21 = vpop.f32.mrf.mxu0 }
 0x16a   : > { %4208 = vst [vmem:[#allocation21_spill] sm:$0xff] %v3385_v12 }
 0x16b   : > { %1197 = vmatmul.f32.gmra.mxu2 %v4177_v25  ;;  %1262 = vmatmul.f32.gmra.mxu3 %v4178_v47  ;;  %v1625_v47 = vld [vmem:[#allocation7 + $0x1e8] sm:$0xff] }
 0x16c   : > { %1306 = vmatmul.f32.gmra.mxu0 %v4209_v43  ;;  %1371 = vmatmul.f32.gmra.mxu1 %v4210_v19  ;;  %v1594_v19 = vld [vmem:[#allocation7 + $0xf0] sm:$0xff] }
 0x16d   : > { %1634 = vmatpush.msrb.mxu0 %v1594_v19  ;;  %1830 = vmatpush.msra.mxu3 %v1625_v47  ;;  %v1592_v47 = vld [vmem:[#allocation7 + $0xe0] sm:$0xff] }
 0x16e   : > { %v743_v57 = vpop.f32.mrf.mxu2  ;;  %v808_v33 = vpop.f32.mrf.mxu3  ;;  %v1624_v19 = vld [vmem:[#allocation7 + $0x1e0] sm:$0xff] }
 0x16f   : > { %v3402_v55 = vadd.f32 %v743_v57, %v3074_v14  ;;  %v3405_v25 = vadd.f32 %v808_v33, %v3077_v61  ;;  %v4214_v33 = vmax.f32 %v3047_v29, 0.0  ;;  %v1593_v57 = vld [vmem:[#allocation7 + $0xe8] sm:$0xff]  ;;  %1635 = vmatpush.msrb.mxu0 %v1592_v47  ;;  %1700 = vmatpush.msrb.mxu1 %v1624_v19  ;;  %v4220_v47 = vmax.f32 %v3089_v30, 0.0 }
 0x170   : > { %1765 = vmatpush.msra.mxu2 %v1593_v57  ;;  %v1590_v57 = vld [vmem:[#allocation7 + $0xd0] sm:$0xff]  ;;  %v1589_v19 = vld [vmem:[#allocation7 + $0xc8] sm:$0xff]  ;;  %v4221_v30 = vmax.f32 %v3118_v6, 0.0  ;;  %v1576_v6 = vld [vmem:[#allocation7 + $0x60] sm:$0xff] }
 0x171   : > { %4211 = vst [vmem:[#allocation22_spill] sm:$0xff] %v3405_v25  ;;  %v4180_v34 = vmax.f32 %v3402_v55, 0.0  ;;  %v4181_v43 = vmax.f32 %v3405_v25, 0.0  ;;  %v3409_v1 = vpop.f32.mrf.mxu0  ;;  %1636 = vmatpush.msrb.mxu0 %v1590_v57 }
 0x172   : > { %4212 = vst [vmem:[#allocation23_spill] sm:$0xff] %v3409_v1 }
 0x173   : > { %1200 = vmatmul.f32.gmra.mxu2 %v4180_v34  ;;  %1265 = vmatmul.f32.gmra.mxu3 %v4181_v43  ;;  %v3419_v34 = vpop.f32.mrf.mxu1 }
 0x174   : > { %1309 = vmatmul.f32.gmra.mxu0 %v4213_v13  ;;  %1374 = vmatmul.f32.gmra.mxu1 %v4214_v33 }
 0x176   : > { %v746_v12 = vpop.f32.mrf.mxu2  ;;  %v811_v1 = vpop.f32.mrf.mxu3 }
 0x177   : > { %v3422_v43 = vadd.f32 %v746_v12, %v3074_v14  ;;  %v3425_v25 = vadd.f32 %v811_v1, %v3077_v61  ;;  %v4215_v14 = vmax.f32 %v3061_v51, 0.0  ;;  %v4216_v61 = vmax.f32 %v3065_v52, 0.0  ;;  %v1591_v12 = vld [vmem:[#allocation7 + $0xd8] sm:$0xff]  ;;  %v1622_v52 = vld [vmem:[#allocation7 + $0x1d0] sm:$0xff] }
 0x178   : > { %v1623_v1 = vld [vmem:[#allocation7 + $0x1d8] sm:$0xff]  ;;  %1766 = vmatpush.msra.mxu2 %v1591_v12  ;;  %v4218_v51 = vmax.f32 %v3095_v32, 0.0  ;;  %v1621_v12 = vld [vmem:[#allocation7 + $0x1c8] sm:$0xff]  ;;  %1701 = vmatpush.msrb.mxu1 %v1622_v52  ;;  %v1584_v32 = vld [vmem:[#allocation7 + $0xa0] sm:$0xff]  ;;  %v4222_v52 = vmax.f32 %v3121_v11, 0.0 }
 0x179   : > { %v4184_v46 = vmax.f32 %v3422_v43, 0.0  ;;  %v4183_v29 = vmax.f32 %v3425_v25, 0.0  ;;  %v3429_v13 = vpop.f32.mrf.mxu0  ;;  %1831 = vmatpush.msra.mxu3 %v1623_v1  ;;  %v1586_v1 = vld [vmem:[#allocation7 + $0xb0] sm:$0xff] }
 0x17a   : > { %1767 = vmatpush.msra.mxu2 %v1589_v19  ;;  %v1587_v19 = vld [vmem:[#allocation7 + $0xb8] sm:$0xff]  ;;  %v1578_v11 = vld [vmem:[#allocation7 + $0x70] sm:$0xff] }
 0x17b   : > { %1203 = vmatmul.f32.gmra.mxu2 %v4184_v46  ;;  %1268 = vmatmul.f32.gmra.mxu3 %v4183_v29  ;;  %v3439_v37 = vpop.f32.mrf.mxu1  ;;  %v4217_v29 = vmax.f32 %v3092_v42, 0.0 }
 0x17c   : > { %1312 = vmatmul.f32.gmra.mxu0 %v4215_v14  ;;  %1377 = vmatmul.f32.gmra.mxu1 %v4216_v61  ;;  %v1588_v14 = vld [vmem:[#allocation7 + $0xc0] sm:$0xff]  ;;  %v4219_v61 = vmax.f32 %v3085_v26, 0.0 }
 0x17d   : > { %1637 = vmatpush.msrb.mxu0 %v1588_v14  ;;  %1832 = vmatpush.msra.mxu3 %v1621_v12  ;;  %v4224_v14 = vmax.f32 %v3115_v0, 0.0  ;;  %v1580_v12 = vld [vmem:[#allocation7 + $0x80] sm:$0xff]  ;;  %v4226_v0 = vmax.f32 %v3147_v4, 0.0 }
 0x17e   : > { %1768 = vmatpush.msra.mxu2 %v1587_v19 }
 0x17f   : > { %1638 = vmatpush.msrb.mxu0 %v1586_v1  ;;  %v1619_v1 = vld [vmem:[#allocation7 + $0x1b8] sm:$0xff] }
 0x180   : > { %1833 = vmatpush.msra.mxu3 %v1619_v1  ;;  %v1572_v1 = vld [vmem:[#allocation7 + $0x40] sm:$0xff] }
 0x181   : > { %v3441_v33 = vpop.f32.mrf.mxu0  ;;  %1639 = vmatpush.msrb.mxu0 %v1584_v32 }
 0x183   : > { %1418 = vmatmul.f32.vlgmr.msrb.gmra.mxu2 %v4217_v29  ;;  %1483 = vmatmul.f32.vlgmr.msrb.gmra.mxu3 %v4218_v51  ;;  %v1582_v29 = vld [vmem:[#allocation7 + $0x90] sm:$0xff]  ;;  %v3455_v26 = vpop.f32.mrf.mxu1 }
 0x184   : > { %1315 = vmatmul.f32.gmra.mxu0 %v4219_v61  ;;  %1380 = vmatmul.f32.gmra.mxu1 %v4220_v47  ;;  %v1620_v61 = vld [vmem:[#allocation7 + $0x1c0] sm:$0xff]  ;;  %v4223_v47 = vmax.f32 %v3111_v63, 0.0  ;;  %v4225_v63 = vmax.f32 %v3144_v9, 0.0 }
 0x185   : > { %1702 = vmatpush.msrb.mxu1 %v1620_v61  ;;  %1640 = vmatpush.msrb.mxu0 %v1582_v29  ;;  %v4228_v29 = vmax.f32 %v3141_v7, 0.0  ;;  %v1574_v61 = vld [vmem:[#allocation7 + $0x50] sm:$0xff] }
 0x186   : > { %v3451_v57 = vpop.f32.mrf.mxu2  ;;  %v3453_v42 = vpop.f32.mrf.mxu3  ;;  %v1570_v7 = vld [vmem:[#allocation7 + $0x30] sm:$0xff] }
 0x187   : > { %1641 = vmatpush.msrb.mxu0 %v1580_v12 }
 0x189   : > { %v3457_v51 = vpop.f32.mrf.mxu0  ;;  %1642 = vmatpush.msrb.mxu0 %v1578_v11  ;;  %v4230_v11 = vmax.f32 %v3173_v8, 0.0 }
 0x18b   : > { %1421 = vmatmul.f32.gmra.mxu2 %v4221_v30  ;;  %1486 = vmatmul.f32.gmra.mxu3 %v4222_v52  ;;  %v1618_v30 = vld [vmem:[#allocation7 + $0x1b0] sm:$0xff]  ;;  %v4227_v52 = vmax.f32 %v3137_v17, 0.0  ;;  %v3479_v19 = vpop.f32.mrf.mxu1  ;;  %v4229_v17 = vmax.f32 %v3170_v41, 0.0 }
 0x18c   : > { %1318 = vmatmul.f32.gmra.mxu0 %v4223_v47  ;;  %1383 = vmatmul.f32.gmra.mxu1 %v4224_v14  ;;  %v1585_v47 = vld [vmem:[#allocation7 + $0xa8] sm:$0xff]  ;;  %v1566_v41 = vld [vmem:[#allocation7 + $0x10] sm:$0xff] }
 0x18d   : > { %v1617_v14 = vld [vmem:[#allocation7 + $0x1a8] sm:$0xff]  ;;  %1643 = vmatpush.msrb.mxu0 %v1576_v6  ;;  %1703 = vmatpush.msrb.mxu1 %v1618_v30  ;;  %v4231_v6 = vmax.f32 %v3163_v48, 0.0  ;;  %v1568_v30 = vld [vmem:[#allocation7 + $0x20] sm:$0xff]  ;;  %v4233_v48 = vmax.f32 %v3196_v5, 0.0 }
 0x18e   : > { %v3467_v32 = vpop.f32.mrf.mxu2  ;;  %v3469_v46 = vpop.f32.mrf.mxu3  ;;  %1769 = vmatpush.msra.mxu2 %v1585_v47  ;;  %1834 = vmatpush.msra.mxu3 %v1617_v14 }
 0x18f   : > { %1644 = vmatpush.msrb.mxu0 %v1574_v61 }
 0x191   : > { %v3481_v12 = vpop.f32.mrf.mxu0  ;;  %1645 = vmatpush.msrb.mxu0 %v1572_v1  ;;  %v4234_v1 = vmax.f32 %v3199_v15, 0.0 }
 0x193   : > { %1424 = vmatmul.f32.gmra.mxu2 %v4225_v63  ;;  %1489 = vmatmul.f32.gmra.mxu3 %v4226_v0  ;;  %v1616_v63 = vld [vmem:[#allocation7 + $0x1a0] sm:$0xff]  ;;  %v4232_v0 = vmax.f32 %v3167_v27, 0.0  ;;  %v3499_v8 = vpop.f32.mrf.mxu1 }
 0x194   : > { %1321 = vmatmul.f32.gmra.mxu0 %v4227_v52  ;;  %1386 = vmatmul.f32.gmra.mxu1 %v4228_v29  ;;  %v1583_v52 = vld [vmem:[#allocation7 + $0x98] sm:$0xff]  ;;  %v1564_v27 = vld [vmem:[#allocation7] sm:$0xff] }
 0x195   : > { %v1615_v29 = vld [vmem:[#allocation7 + $0x198] sm:$0xff]  ;;  %1646 = vmatpush.msrb.mxu0 %v1570_v7  ;;  %1704 = vmatpush.msrb.mxu1 %v1616_v63  ;;  %v1614_v7 = vld [vmem:[#allocation7 + $0x190] sm:$0xff]  ;;  %v1581_v63 = vld [vmem:[#allocation7 + $0x88] sm:$0xff] }
 0x196   : > { %v3483_v9 = vpop.f32.mrf.mxu2  ;;  %v3485_v4 = vpop.f32.mrf.mxu3  ;;  %1770 = vmatpush.msra.mxu2 %v1583_v52  ;;  %1835 = vmatpush.msra.mxu3 %v1615_v29  ;;  %v4237_v29 = vmax.f32 %v3222_v28, 0.0 }
 0x197   : > { %1647 = vmatpush.msrb.mxu0 %v1568_v30  ;;  %1705 = vmatpush.msrb.mxu1 %v1614_v7  ;;  %v1579_v7 = vld [vmem:[#allocation7 + $0x78] sm:$0xff] }
 0x198   : > { %1771 = vmatpush.msra.mxu2 %v1581_v63 }
 0x199   : > { %v3501_v14 = vpop.f32.mrf.mxu0  ;;  %1648 = vmatpush.msrb.mxu0 %v1566_v41  ;;  %v4238_v41 = vmax.f32 %v3225_v58, 0.0 }
 0x19a   : > { %1772 = vmatpush.msra.mxu2 %v1579_v7  ;;  %v4245_v7 = vmax.f32 %v3266_v39, 0.0 }
 0x19b   : > { %1427 = vmatmul.f32.gmra.mxu2 %v4229_v17  ;;  %1492 = vmatmul.f32.gmra.mxu3 %v4230_v11  ;;  %v4235_v17 = vmax.f32 %v3189_v59, 0.0  ;;  %v4236_v11 = vmax.f32 %v3193_v31, 0.0  ;;  %v3523_v31 = vpop.f32.mrf.mxu1 }
 0x19c   : > { %1324 = vmatmul.f32.gmra.mxu0 %v4231_v6  ;;  %1389 = vmatmul.f32.gmra.mxu1 %v4232_v0  ;;  %v1613_v6 = vld [vmem:[#allocation7 + $0x188] sm:$0xff]  ;;  %v3514_v0 = vld [vmem:[%s4111_s4] sm:$0x3] }
 0x19d   : > { %1649 = vmatpush.msrb.mxu0 %v1564_v27  ;;  %1836 = vmatpush.msra.mxu3 %v1613_v6  ;;  %v3521_v59 = vperm.slane %v3514_v0, 0  ;;  %v1612_v27 = vld [vmem:[#allocation7 + $0x180] sm:$0xff]  ;;  %v4241_v6 = vmax.f32 %v3248_v35, 0.0 }
 0x19e   : > { %v3495_v61 = vpop.f32.mrf.mxu2  ;;  %v3497_v47 = vpop.f32.mrf.mxu3  ;;  %1706 = vmatpush.msrb.mxu1 %v1612_v27  ;;  %v1609_v27 = vld [vmem:[#allocation7 + $0x168] sm:$0xff] }
 0x19f   : > { %v1030_v52 = vadd.f32 %v3273_v22, %v3521_v59  ;;  %v1033_v58 = vadd.f32 %v3291_v54, %v3521_v59  ;;  %v1577_v54 = vld [vmem:[#allocation7 + $0x68] sm:$0xff] }
 0x1a0   : > { %1773 = vmatpush.msra.mxu2 %v1577_v54  ;;  %v1605_v54 = vld [vmem:[#allocation7 + $0x148] sm:$0xff] }
 0x1a1   : > { %v3525_v30 = vpop.f32.mrf.mxu0 }
 0x1a3   : > { %1430 = vmatmul.f32.gmra.mxu2 %v4233_v48  ;;  %1495 = vmatmul.f32.gmra.mxu3 %v4234_v1  ;;  %v4239_v48 = vmax.f32 %v3215_v24, 0.0  ;;  %v4240_v1 = vmax.f32 %v3219_v40, 0.0  ;;  %v3545_v63 = vpop.f32.mrf.mxu1 }
 0x1a4   : > { %1327 = vmatmul.f32.gmra.mxu0 %v4235_v17  ;;  %1392 = vmatmul.f32.gmra.mxu1 %v4236_v11  ;;  %v1611_v17 = vld [vmem:[#allocation7 + $0x178] sm:$0xff]  ;;  %v1095_v11 = vadd.f32 %v3301_v44, %v1030_v52  ;;  %v1610_v44 = vld [vmem:[#allocation7 + $0x170] sm:$0xff]  ;;  %v4243_v52 = vmax.f32 %v3241_v36, 0.0  ;;  %v1036_v36 = vadd.f32 %v3311_v38, %v3521_v59 }
 0x1a5   : > { %1837 = vmatpush.msra.mxu3 %v1611_v17  ;;  %1707 = vmatpush.msrb.mxu1 %v1610_v44  ;;  %v1575_v17 = vld [vmem:[#allocation7 + $0x58] sm:$0xff] }
 0x1a6   : > { %v3516_v5 = vpop.f32.mrf.mxu2  ;;  %v3518_v15 = vpop.f32.mrf.mxu3  ;;  %v1160_v24 = vadd.f32 %v3451_v57, %v1095_v11  ;;  %v1098_v57 = vadd.f32 %v3321_v60, %v1033_v58  ;;  %v4246_v60 = vmax.f32 %v3269_v18, 0.0  ;;  %v1607_v11 = vld [vmem:[#allocation7 + $0x158] sm:$0xff]  ;;  %1774 = vmatpush.msra.mxu2 %v1575_v17 }
 0x1a7   : > { %1838 = vmatpush.msra.mxu3 %v1609_v27  ;;  %v1571_v17 = vld [vmem:[#allocation7 + $0x38] sm:$0xff] }
 0x1a9   : > { %v3547_v40 = vpop.f32.mrf.mxu0  ;;  %1839 = vmatpush.msra.mxu3 %v1607_v11  ;;  %v1603_v11 = vld [vmem:[#allocation7 + $0x138] sm:$0xff] }
 0x1ab   : > { %1433 = vmatmul.f32.gmra.mxu2 %v4237_v29  ;;  %1498 = vmatmul.f32.gmra.mxu3 %v4238_v41  ;;  %v4242_v29 = vmax.f32 %v3251_v16, 0.0  ;;  %v4244_v41 = vmax.f32 %v3245_v45, 0.0  ;;  %v3575_v58 = vpop.f32.mrf.mxu1 }
 0x1ac   : > { %1330 = vmatmul.f32.gmra.mxu0 %v4239_v48  ;;  %1395 = vmatmul.f32.gmra.mxu1 %v4240_v1  ;;  %v3559_v48 = vadd.f32 %v3453_v42, %v1160_v24  ;;  %v1163_v1 = vadd.f32 %v3467_v32, %v1098_v57  ;;  %v1608_v42 = vld [vmem:[#allocation7 + $0x160] sm:$0xff]  ;;  %v1101_v32 = vadd.f32 %v3347_v2, %v1036_v36  ;;  %v1606_v2 = vld [vmem:[#allocation7 + $0x150] sm:$0xff] }
 0x1ad   : > { %1708 = vmatpush.msrb.mxu1 %v1608_v42  ;;  %1840 = vmatpush.msra.mxu3 %v1605_v54  ;;  %v1042_v36 = vadd.f32 %v3351_v62, %v3521_v59  ;;  %v1604_v42 = vld [vmem:[#allocation7 + $0x140] sm:$0xff] }
 0x1ae   : > { %v3538_v22 = vpop.f32.mrf.mxu2  ;;  %v3540_v28 = vpop.f32.mrf.mxu3  ;;  %v1532_v45 = vmax.f32 %v3559_v48, 0.0  ;;  %v3581_v39 = vadd.f32 %v3469_v46, %v1163_v1  ;;  %v1166_v44 = vadd.f32 %v3483_v9, %v1101_v32  ;;  %v1573_v46 = vld [vmem:[#allocation7 + $0x48] sm:$0xff] }
 0x1af   : > { %1709 = vmatpush.msrb.mxu1 %v1606_v2  ;;  %1775 = vmatpush.msra.mxu2 %v1573_v46  ;;  %v1107_v62 = vadd.f32 %v3399_v56, %v1042_v36  ;;  %v4252_v46 = vld [vmem:[#allocation15_spill] sm:$0xff] }
 0x1b0   : > { %v3599_v27 = vadd.f32 %v3485_v4, %v1166_v44  ;;  %v4250_v4 = vld [vmem:[#allocation14_spill] sm:$0xff]  ;;  %1841 = vmatpush.msra.mxu3 %v1603_v11  ;;  %v4253_v56 = vmax.f32 %v4252_v46, 0.0  ;;  %v1569_v36 = vld [vmem:[#allocation7 + $0x28] sm:$0xff]  ;;  %v1599_v46 = vld [vmem:[#allocation7 + $0x118] sm:$0xff] }
 0x1b1   : > { %v3577_v38 = vpop.f32.mrf.mxu0  ;;  %1710 = vmatpush.msrb.mxu1 %v1604_v42  ;;  %1776 = vmatpush.msra.mxu2 %v1571_v17  ;;  %v1172_v2 = vadd.f32 %v3516_v5, %v1107_v62 }
 0x1b2   : > { %v1536_v1 = vmax.f32 %v3599_v27, 0.0 }
 0x1b3   : > { %1436 = vmatmul.f32.gmra.mxu2 %v4241_v6  ;;  %1501 = vmatmul.f32.gmra.mxu3 %v4242_v29  ;;  %v1039_v6 = vadd.f32 %v3331_v50, %v3521_v59  ;;  %v1534_v29 = vmax.f32 %v3581_v39, 0.0  ;;  %v1954_v39 = vld [vmem:[%s4114_s7 + $0xe0] sm:$0xff] }
 0x1b4   : > { %1333 = vmatmul.f32.gmra.mxu0 %v4243_v52  ;;  %1398 = vmatmul.f32.gmra.mxu1 %v4244_v41  ;;  %v4247_v52 = vmax.f32 %v3284_v49, 0.0  ;;  %v4248_v41 = vmax.f32 %v3287_v20, 0.0  ;;  %v3605_v20 = vpop.f32.mrf.mxu1 }
 0x1b5   : > { %v1104_v50 = vadd.f32 %v3371_v10, %v1039_v6  ;;  %v4249_v10 = vmax.f32 %v3304_v53, 0.0  ;;  %1777 = vmatpush.msra.mxu2 %v1569_v36 }
 0x1b6   : > { %v3561_v35 = vpop.f32.mrf.mxu2  ;;  %v3563_v16 = vpop.f32.mrf.mxu3 }
 0x1b9   : > { %v3607_v57 = vpop.f32.mrf.mxu0 }
 0x1bb   : > { %1439 = vmatmul.f32.gmra.mxu2 %v4245_v7  ;;  %1504 = vmatmul.f32.gmra.mxu3 %v4246_v60  ;;  %v1169_v7 = vadd.f32 %v3495_v61, %v1104_v50  ;;  %v4251_v60 = vmax.f32 %v4250_v4, 0.0  ;;  %v1602_v50 = vld [vmem:[#allocation7 + $0x130] sm:$0xff] }
 0x1bc   : > { %1650 = vmatmul.f32.vlgmr.msrb.gmra.mxu0 %v1532_v45  ;;  %v3627_v6 = vpop.f32.mrf.mxu1  ;;  %1711 = vmatpush.msrb.mxu1 %v1602_v50  ;;  %v4259_v50 = vld [vmem:[#allocation23_spill] sm:$0xff] }
 0x1bd   : > { %v3621_v32 = vadd.f32 %v3497_v47, %v1169_v7  ;;  %v4254_v47 = vld [vmem:[#allocation16_spill] sm:$0xff]  ;;  %v1601_v7 = vld [vmem:[#allocation7 + $0x128] sm:$0xff]  ;;  %v1051_v36 = vadd.f32 %v4259_v50, %v3521_v59 }
 0x1be   : > { %v3583_v18 = vpop.f32.mrf.mxu2  ;;  %v3585_v24 = vpop.f32.mrf.mxu3  ;;  %v4255_v54 = vmax.f32 %v4254_v47, 0.0  ;;  %1842 = vmatpush.msra.mxu3 %v1601_v7 }
 0x1c0   : > { %1843 = vmatpush.msra.mxu3 %v1599_v46 }
 0x1c1   : > { %v3629_v44 = vpop.f32.mrf.mxu0 }
 0x1c3   : > { %1442 = vmatmul.f32.gmra.mxu2 %v4247_v52  ;;  %1507 = vmatmul.f32.gmra.mxu3 %v4248_v41  ;;  %v1045_v52 = vadd.f32 %v3369_v3, %v3521_v59  ;;  %v1538_v41 = vmax.f32 %v3621_v32, 0.0 }
 0x1c4   : > { %1653 = vmatmul.f32.gmra.mxu0 %v1534_v29  ;;  %v3653_v11 = vpop.f32.mrf.mxu1 }
 0x1c5   : > { %v1110_v3 = vadd.f32 %v3419_v34, %v1045_v52  ;;  %v4256_v34 = vmax.f32 %v3342_v23, 0.0 }
 0x1c6   : > { %v3601_v9 = vpop.f32.mrf.mxu2  ;;  %v3603_v49 = vpop.f32.mrf.mxu3 }
 0x1c7   : > { %v1175_v17 = vadd.f32 %v3538_v22, %v1110_v3 }
 0x1c9   : > { %v3655_v62 = vpop.f32.mrf.mxu0 }
 0x1cb   : > { %1445 = vmatmul.f32.gmra.mxu2 %v4249_v10  ;;  %1510 = vmatmul.f32.gmra.mxu3 %v4251_v60  ;;  %v3643_v10 = vadd.f32 %v3518_v15, %v1172_v2  ;;  %v1048_v60 = vadd.f32 %v3389_v21, %v3521_v59  ;;  %v4257_v15 = vld [vmem:[#allocation17_spill] sm:$0xff]  ;;  %v1600_v2 = vld [vmem:[#allocation7 + $0x120] sm:$0xff] }
 0x1cc   : > { %1656 = vmatmul.f32.gmra.mxu0 %v1536_v1  ;;  %v4258_v52 = vmax.f32 %v4257_v15, 0.0  ;;  %1712 = vmatpush.msrb.mxu1 %v1600_v2  ;;  %v1567_v21 = vld [vmem:[#allocation7 + $0x18] sm:$0xff] }
 0x1cd   : > { %v1540_v42 = vmax.f32 %v3643_v10, 0.0  ;;  %1778 = vmatpush.msra.mxu2 %v1567_v21  ;;  %v1113_v22 = vadd.f32 %v3439_v37, %v1048_v60  ;;  %v4262_v37 = vld [vmem:[#allocation19_spill] sm:$0xff]  ;;  %v1116_v21 = vadd.f32 %v3455_v26, %v1051_v36  ;;  %v1054_v26 = vadd.f32 %v3429_v13, %v3521_v59 }
 0x1ce   : > { %v3623_v61 = vpop.f32.mrf.mxu2  ;;  %v3625_v53 = vpop.f32.mrf.mxu3  ;;  %v4263_v60 = vmax.f32 %v4262_v37, 0.0  ;;  %v4266_v37 = vld [vmem:[#allocation21_spill] sm:$0xff] }
 0x1cf   : > { %v1178_v3 = vadd.f32 %v3561_v35, %v1113_v22  ;;  %v1181_v50 = vadd.f32 %v3583_v18, %v1116_v21  ;;  %v1119_v21 = vadd.f32 %v3479_v19, %v1054_v26  ;;  %v1941_v19 = vld [vmem:[%s4114_s7 + $0x78] sm:$0xff] }
 0x1d0   : > { %1962 = vmatpush.msra.mxu0 %v1941_v19 }
 0x1d1   : > { %v3681_v2 = vpop.f32.mrf.mxu0  ;;  %v3685_v35 = vadd.f32 %v3563_v16, %v1178_v3  ;;  %v3702_v16 = vadd.f32 %v3585_v24, %v1181_v50  ;;  %v1184_v13 = vadd.f32 %v3601_v9, %v1119_v21  ;;  %v1057_v24 = vadd.f32 %v3441_v33, %v3521_v59  ;;  %v1957_v9 = vld [vmem:[%s4114_s7 + $0xf8] sm:$0xff] }
 0x1d3   : > { %1448 = vmatmul.f32.gmra.mxu2 %v4253_v56  ;;  %1513 = vmatmul.f32.gmra.mxu3 %v4255_v54  ;;  %v3665_v56 = vadd.f32 %v3540_v28, %v1175_v17  ;;  %v1565_v54 = vld [vmem:[#allocation7 + $0x8] sm:$0xff]  ;;  %v1598_v28 = vld [vmem:[#allocation7 + $0x110] sm:$0xff]  ;;  %v1122_v33 = vadd.f32 %v3499_v8, %v1057_v24  ;;  %v3753_v24 = vperm.slane %v3514_v0, 1 }
 0x1d4   : > { %1659 = vmatmul.f32.gmra.mxu0 %v1538_v41  ;;  %1779 = vmatpush.msra.mxu2 %v1565_v54  ;;  %v1597_v17 = vld [vmem:[#allocation7 + $0x108] sm:$0xff]  ;;  %v1544_v54 = vmax.f32 %v3685_v35, 0.0  ;;  %v1940_v8 = vld [vmem:[%s4114_s7 + $0x70] sm:$0xff] }
 0x1d5   : > { %v1542_v7 = vmax.f32 %v3665_v56, 0.0  ;;  %1713 = vmatpush.msrb.mxu1 %v1598_v28  ;;  %1844 = vmatpush.msra.mxu3 %v1597_v17  ;;  %v1596_v28 = vld [vmem:[#allocation7 + $0x100] sm:$0xff] }
 0x1d6   : > { %v3645_v5 = vpop.f32.mrf.mxu2  ;;  %v3647_v4 = vpop.f32.mrf.mxu3  ;;  %1963 = vmatpush.msra.mxu0 %v1940_v8  ;;  %v1293_v8 = vadd.f32 %v3629_v44, %v3753_v24 }
 0x1d7   : > { %1714 = vmatpush.msrb.mxu1 %v1596_v28 }
 0x1d9   : > { %v3708_v17 = vpop.f32.mrf.mxu0  ;;  %2027 = vmatpush.msra.mxu1 %v1957_v9  ;;  %v1290_v9 = vadd.f32 %v3607_v57, %v3753_v24 }
 0x1db   : > { %1451 = vmatmul.f32.gmra.mxu2 %v4256_v34  ;;  %1516 = vmatmul.f32.gmra.mxu3 %v4258_v52  ;;  %v4260_v34 = vld [vmem:[#allocation18_spill] sm:$0xff]  ;;  %v1354_v52 = vpop.f32.mrf.mxu1 }
 0x1dc   : > { %1662 = vmatmul.f32.gmra.mxu0 %v1540_v42  ;;  %v4261_v15 = vmax.f32 %v4260_v34, 0.0  ;;  %v4264_v34 = vld [vmem:[#allocation20_spill] sm:$0xff]  ;;  %v1355_v57 = vadd.f32 %v1354_v52, %v1290_v9 }
 0x1de   : > { %v3667_v47 = vpop.f32.mrf.mxu2  ;;  %v3669_v23 = vpop.f32.mrf.mxu3 }
 0x1e1   : > { %v3737_v21 = vpop.f32.mrf.mxu0 }
 0x1e3   : > { %1454 = vmatmul.f32.gmra.mxu2 %v4261_v15  ;;  %1519 = vmatmul.f32.gmra.mxu3 %v4263_v60  ;;  %v4265_v15 = vmax.f32 %v4264_v34, 0.0  ;;  %v4267_v60 = vmax.f32 %v4266_v37, 0.0  ;;  %v1357_v3 = vpop.f32.mrf.mxu1  ;;  %v1546_v34 = vmax.f32 %v3702_v16, 0.0  ;;  %v4269_v37 = vld [vmem:[#allocation22_spill] sm:$0xff] }
 0x1e4   : > { %1665 = vmatmul.f32.gmra.mxu0 %v1542_v7  ;;  %v1358_v44 = vadd.f32 %v1357_v3, %v1293_v8 }
 0x1e6   : > { %v3687_v46 = vpop.f32.mrf.mxu2  ;;  %v3689_v22 = vpop.f32.mrf.mxu3 }
 0x1eb   : > { %1457 = vmatmul.f32.gmra.mxu2 %v4265_v15  ;;  %1522 = vmatmul.f32.gmra.mxu3 %v4267_v60  ;;  %v4268_v15 = vmax.f32 %v3402_v55, 0.0  ;;  %v4270_v60 = vmax.f32 %v4269_v37, 0.0  ;;  %v3728_v55 = vadd.f32 %v3603_v49, %v1184_v13  ;;  %v3735_v26 = vpop.f32.mrf.mxu1  ;;  %v1187_v37 = vadd.f32 %v3623_v61, %v1122_v33 }
 0x1ec   : > { %1668 = vmatmul.f32.gmra.mxu0 %v1544_v54  ;;  %v4272_v49 = vmax.f32 %v3425_v25, 0.0  ;;  %v1060_v13 = vadd.f32 %v3457_v51, %v3521_v59 }
 0x1ed   : > { %v3759_v25 = vadd.f32 %v3625_v53, %v1187_v37  ;;  %v1063_v53 = vadd.f32 %v3481_v12, %v3521_v59 }
 0x1ee   : > { %v3704_v36 = vpop.f32.mrf.mxu2  ;;  %v3706_v18 = vpop.f32.mrf.mxu3  ;;  %v1125_v19 = vadd.f32 %v3523_v31, %v1060_v13  ;;  %v1939_v31 = vld [vmem:[%s4114_s7 + $0x68] sm:$0xff] }
 0x1ef   : > { %v1550_v0 = vmax.f32 %v3759_v25, 0.0  ;;  %1964 = vmatpush.msra.mxu0 %v1939_v31  ;;  %v1128_v13 = vadd.f32 %v3545_v63, %v1063_v53  ;;  %v1938_v63 = vld [vmem:[%s4114_s7 + $0x60] sm:$0xff] }
 0x1f0   : > { %v1190_v33 = vadd.f32 %v3645_v5, %v1125_v19  ;;  %v1955_v5 = vld [vmem:[%s4114_s7 + $0xe8] sm:$0xff] }
 0x1f1   : > { %v1193_v19 = vadd.f32 %v3667_v47, %v1128_v13  ;;  %1965 = vmatpush.msra.mxu0 %v1938_v63 }
 0x1f2   : > { %v3787_v37 = vadd.f32 %v3647_v4, %v1190_v33  ;;  %v1066_v4 = vadd.f32 %v3501_v14, %v3521_v59 }
 0x1f3   : > { %1460 = vmatmul.f32.gmra.mxu2 %v4268_v15  ;;  %1525 = vmatmul.f32.gmra.mxu3 %v4270_v60  ;;  %v1548_v15 = vmax.f32 %v3728_v55, 0.0  ;;  %v4271_v60 = vmax.f32 %v3422_v43, 0.0  ;;  %v1956_v43 = vld [vmem:[%s4114_s7 + $0xf0] sm:$0xff]  ;;  %v3811_v14 = vadd.f32 %v3669_v23, %v1193_v19  ;;  %v1069_v23 = vadd.f32 %v3525_v30, %v3521_v59 }
 0x1f4   : > { %1671 = vmatmul.f32.gmra.mxu0 %v1546_v34  ;;  %2028 = vmatpush.msra.mxu1 %v1956_v43  ;;  %v1552_v52 = vmax.f32 %v3787_v37, 0.0  ;;  %v1131_v3 = vadd.f32 %v3575_v58, %v1066_v4  ;;  %v1937_v58 = vld [vmem:[%s4114_s7 + $0x58] sm:$0xff] }
 0x1f5   : > { %1966 = vmatpush.msra.mxu0 %v1937_v58  ;;  %v1134_v19 = vadd.f32 %v3605_v20, %v1069_v23 }
 0x1f6   : > { %v3730_v50 = vpop.f32.mrf.mxu2  ;;  %v3732_v28 = vpop.f32.mrf.mxu3  ;;  %2029 = vmatpush.msra.mxu1 %v1955_v5 }
 0x1f7   : > { %v1199_v63 = vadd.f32 %v3704_v36, %v1134_v19 }
 0x1f8   : > { %2030 = vmatpush.msra.mxu1 %v1954_v39  ;;  %v1072_v39 = vadd.f32 %v3547_v40, %v3521_v59 }
 0x1f9   : > { %v3855_v32 = vadd.f32 %v3706_v18, %v1199_v63 }
 0x1fa   : > { %v1137_v40 = vadd.f32 %v3627_v6, %v1072_v39  ;;  %v1075_v6 = vadd.f32 %v3577_v38, %v3521_v59  ;;  %v1305_v38 = vadd.f32 %v3737_v21, %v3753_v24  ;;  %v1950_v21 = vld [vmem:[%s4114_s7 + $0xc0] sm:$0xff] }
 0x1fb   : > { %1463 = vmatmul.f32.gmra.mxu2 %v4271_v60  ;;  %1528 = vmatmul.f32.gmra.mxu3 %v4272_v49  ;;  %v3770_v60 = vpop.f32.mrf.mxu1  ;;  %v3772_v49 = vpop.f32.mrf.mxu0 }
 0x1fc   : > { %1674 = vmatmul.f32.gmra.mxu0 %v1548_v15  ;;  %v1140_v59 = vadd.f32 %v3653_v11, %v1075_v6  ;;  %v1308_v19 = vadd.f32 %v3772_v49, %v3753_v24  ;;  %v1949_v49 = vld [vmem:[%s4114_s7 + $0xb8] sm:$0xff] }
 0x1fe   : > { %v3761_v61 = vpop.f32.mrf.mxu2  ;;  %v3763_v51 = vpop.f32.mrf.mxu3 }
 0x203   : > { %1780 = vmatmul.f32.vlgmr.msra.gmra.mxu2 %v1532_v45  ;;  %v3803_v33 = vpop.f32.mrf.mxu1  ;;  %v3805_v53 = vpop.f32.mrf.mxu0 }
 0x204   : > { %1677 = vmatmul.f32.gmra.mxu0 %v1550_v0 }
 0x206   : > { %v1419_v48 = vpop.f32.mrf.mxu2  ;;  %v1484_v45 = vpop.f32.mrf.mxu3 }
 0x207   : > { %v1420_v12 = vadd.f32 %v1419_v48, %v1355_v57  ;;  %v1296_v57 = vadd.f32 %v3655_v62, %v3753_v24  ;;  %v1554_v48 = vmax.f32 %v3811_v14, 0.0 }
 0x209   : > { %v1485_v43 = vadd.f32 %v1484_v45, %v1420_v12  ;;  %v1196_v45 = vadd.f32 %v3687_v46, %v1131_v3  ;;  %v1361_v62 = vadd.f32 %v3735_v26, %v1296_v57  ;;  %v1953_v46 = vld [vmem:[%s4114_s7 + $0xd8] sm:$0xff]  ;;  %v1299_v26 = vadd.f32 %v3681_v2, %v3753_v24  ;;  %v1952_v2 = vld [vmem:[%s4114_s7 + $0xd0] sm:$0xff] }
 0x20a   : > { %2031 = vmatpush.msra.mxu1 %v1953_v46  ;;  %v1558_v57 = vmax.f32 %v3855_v32, 0.0 }
 0x20b   : > { %v1533_v9 = vmax.f32 %v1485_v43, 0.0  ;;  %1783 = vmatmul.f32.gmra.mxu2 %v1534_v29  ;;  %v3832_v27 = vadd.f32 %v3689_v22, %v1196_v45  ;;  %v1369_v13 = vpop.f32.mrf.mxu1  ;;  %v3834_v8 = vpop.f32.mrf.mxu0  ;;  %v1364_v20 = vadd.f32 %v3770_v60, %v1299_v26  ;;  %v1935_v45 = vld [vmem:[%s4114_s7 + $0x48] sm:$0xff] }
 0x20c   : > { %1680 = vmatmul.f32.gmra.mxu0 %v1552_v52  ;;  %2032 = vmatpush.msra.mxu1 %v1952_v2  ;;  %v1370_v11 = vadd.f32 %v1369_v13, %v1305_v38  ;;  %v1930_v38 = vld [vmem:[%s4114_s7 + $0x20] sm:$0xff] }
 0x20d   : > { %1715 = vmatmul.f32.vlgmr.msrb.gmra.mxu1 %v1533_v9  ;;  %1845 = vmatmul.f32.vlgmr.msra.gmra.mxu3 %v1533_v9  ;;  %v1556_v4 = vmax.f32 %v3832_v27, 0.0 }
 0x20e   : > { %v1422_v29 = vpop.f32.mrf.mxu2  ;;  %v1487_v47 = vpop.f32.mrf.mxu3 }
 0x20f   : > { %v1423_v31 = vadd.f32 %v1422_v29, %v1358_v44  ;;  %v1936_v44 = vld [vmem:[%s4114_s7 + $0x50] sm:$0xff] }
 0x210   : > { %1967 = vmatpush.msra.mxu0 %v1936_v44 }
 0x211   : > { %v1488_v5 = vadd.f32 %v1487_v47, %v1423_v31  ;;  %v1302_v47 = vadd.f32 %v3708_v17, %v3753_v24 }
 0x212   : > { %1968 = vmatpush.msra.mxu0 %v1935_v45  ;;  %v1931_v45 = vld [vmem:[%s4114_s7 + $0x28] sm:$0xff] }
 0x213   : > { %v1535_v12 = vmax.f32 %v1488_v5, 0.0  ;;  %1786 = vmatmul.f32.gmra.mxu2 %v1536_v1  ;;  %v1372_v60 = vpop.f32.mrf.mxu1  ;;  %v3860_v31 = vpop.f32.mrf.mxu0  ;;  %v1202_v5 = vadd.f32 %v3730_v50, %v1137_v40  ;;  %v1367_v17 = vadd.f32 %v3803_v33, %v1302_v47  ;;  %v1951_v50 = vld [vmem:[%s4114_s7 + $0xc8] sm:$0xff]  ;;  %v1948_v40 = vld [vmem:[%s4114_s7 + $0xb0] sm:$0xff] }
 0x214   : > { %1683 = vmatmul.f32.gmra.mxu0 %v1554_v48  ;;  %2033 = vmatpush.msra.mxu1 %v1951_v50  ;;  %v1373_v63 = vadd.f32 %v1372_v60, %v1308_v19  ;;  %v1317_v55 = vadd.f32 %v3860_v31, %v3753_v24 }
 0x215   : > { %1718 = vmatmul.f32.gmra.mxu1 %v1535_v12  ;;  %1848 = vmatmul.f32.gmra.mxu3 %v1535_v12  ;;  %v3878_v10 = vadd.f32 %v3732_v28, %v1202_v5 }
 0x216   : > { %v1425_v1 = vpop.f32.mrf.mxu2  ;;  %v1490_v30 = vpop.f32.mrf.mxu3  ;;  %2034 = vmatpush.msra.mxu1 %v1950_v21 }
 0x217   : > { %v1426_v43 = vadd.f32 %v1425_v1, %v1361_v62  ;;  %v1560_v58 = vmax.f32 %v3878_v10, 0.0  ;;  %v1205_v62 = vadd.f32 %v3761_v61, %v1140_v59 }
 0x218   : > { %2035 = vmatpush.msra.mxu1 %v1949_v49 }
 0x219   : > { %v1491_v9 = vadd.f32 %v1490_v30, %v1426_v43  ;;  %v1934_v30 = vld [vmem:[%s4114_s7 + $0x40] sm:$0xff]  ;;  %v3898_v61 = vadd.f32 %v3763_v51, %v1205_v62  ;;  %v1933_v51 = vld [vmem:[%s4114_s7 + $0x38] sm:$0xff] }
 0x21a   : > { %1969 = vmatpush.msra.mxu0 %v1934_v30  ;;  %2036 = vmatpush.msra.mxu1 %v1948_v40  ;;  %v1946_v62 = vld [vmem:[%s4114_s7 + $0xa0] sm:$0xff] }
 0x21b   : > { %v1537_v22 = vmax.f32 %v1491_v9, 0.0  ;;  %1789 = vmatmul.f32.gmra.mxu2 %v1538_v41  ;;  %v1375_v46 = vpop.f32.mrf.mxu1  ;;  %v3885_v1 = vpop.f32.mrf.mxu0  ;;  %v1562_v13 = vmax.f32 %v3898_v61, 0.0 }
 0x21c   : > { %1686 = vmatmul.f32.gmra.mxu0 %v1556_v4  ;;  %v1320_v25 = vadd.f32 %v3885_v1, %v3753_v24 }
 0x21d   : > { %1721 = vmatmul.f32.gmra.mxu1 %v1537_v22  ;;  %1851 = vmatmul.f32.gmra.mxu3 %v1537_v22 }
 0x21e   : > { %v1428_v41 = vpop.f32.mrf.mxu2  ;;  %v1493_v36 = vpop.f32.mrf.mxu3  ;;  %1970 = vmatpush.msra.mxu0 %v1933_v51  ;;  %v1928_v51 = vld [vmem:[%s4114_s7 + $0x10] sm:$0xff] }
 0x21f   : > { %v1429_v29 = vadd.f32 %v1428_v41, %v1364_v20  ;;  %v1311_v20 = vadd.f32 %v3805_v53, %v3753_v24 }
 0x221   : > { %v1494_v3 = vadd.f32 %v1493_v36, %v1429_v29  ;;  %v1932_v36 = vld [vmem:[%s4114_s7 + $0x30] sm:$0xff]  ;;  %v1376_v29 = vadd.f32 %v1375_v46, %v1311_v20 }
 0x222   : > { %1971 = vmatpush.msra.mxu0 %v1932_v36  ;;  %v1943_v36 = vld [vmem:[%s4114_s7 + $0x88] sm:$0xff] }
 0x223   : > { %v1539_v18 = vmax.f32 %v1494_v3, 0.0  ;;  %1792 = vmatmul.f32.gmra.mxu2 %v1540_v42  ;;  %v1378_v22 = vpop.f32.mrf.mxu1  ;;  %v3910_v44 = vpop.f32.mrf.mxu0 }
 0x224   : > { %1689 = vmatmul.f32.gmra.mxu0 %v1558_v57  ;;  %v1323_v37 = vadd.f32 %v3910_v44, %v3753_v24 }
 0x225   : > { %1724 = vmatmul.f32.gmra.mxu1 %v1539_v18  ;;  %1854 = vmatmul.f32.gmra.mxu3 %v1539_v18 }
 0x226   : > { %v1431_v42 = vpop.f32.mrf.mxu2  ;;  %v1496_v12 = vpop.f32.mrf.mxu3  ;;  %1972 = vmatpush.msra.mxu0 %v1931_v45 }
 0x227   : > { %v1432_v23 = vadd.f32 %v1431_v42, %v1367_v17  ;;  %v1947_v17 = vld [vmem:[%s4114_s7 + $0xa8] sm:$0xff] }
 0x228   : > { %2037 = vmatpush.msra.mxu1 %v1947_v17  ;;  %1973 = vmatpush.msra.mxu0 %v1930_v38 }
 0x229   : > { %v1497_v33 = vadd.f32 %v1496_v12, %v1432_v23 }
 0x22a   : > { %2038 = vmatpush.msra.mxu1 %v1946_v62 }
 0x22b   : > { %v1541_v28 = vmax.f32 %v1497_v33, 0.0  ;;  %1795 = vmatmul.f32.gmra.mxu2 %v1542_v7  ;;  %v1381_v53 = vpop.f32.mrf.mxu1  ;;  %v3925_v3 = vpop.f32.mrf.mxu0 }
 0x22c   : > { %1692 = vmatmul.f32.gmra.mxu0 %v1560_v58  ;;  %v1382_v33 = vadd.f32 %v1381_v53, %v1317_v55  ;;  %v1326_v14 = vadd.f32 %v3925_v3, %v3753_v24 }
 0x22d   : > { %1727 = vmatmul.f32.gmra.mxu1 %v1541_v28  ;;  %1857 = vmatmul.f32.gmra.mxu3 %v1541_v28 }
 0x22e   : > { %v1434_v43 = vpop.f32.mrf.mxu2  ;;  %v1499_v56 = vpop.f32.mrf.mxu3 }
 0x22f   : > { %v1435_v7 = vadd.f32 %v1434_v43, %v1370_v11  ;;  %v1929_v43 = vld [vmem:[%s4114_s7 + $0x18] sm:$0xff] }
 0x230   : > { %1974 = vmatpush.msra.mxu0 %v1929_v43 }
 0x231   : > { %v1500_v26 = vadd.f32 %v1499_v56, %v1435_v7  ;;  %v1945_v7 = vld [vmem:[%s4114_s7 + $0x98] sm:$0xff] }
 0x232   : > { %2039 = vmatpush.msra.mxu1 %v1945_v7  ;;  %1975 = vmatpush.msra.mxu0 %v1928_v51 }
 0x233   : > { %v1543_v9 = vmax.f32 %v1500_v26, 0.0  ;;  %1798 = vmatmul.f32.gmra.mxu2 %v1544_v54  ;;  %v1328_v12 = vpop.f32.mrf.mxu0 }
 0x234   : > { %1695 = vmatmul.f32.gmra.mxu0 %v1562_v13  ;;  %v1329_v27 = vadd.f32 %v1328_v12, %v3753_v24 }
 0x235   : > { %1730 = vmatmul.f32.gmra.mxu1 %v1543_v9  ;;  %1860 = vmatmul.f32.gmra.mxu3 %v1543_v9 }
 0x236   : > { %v1437_v39 = vpop.f32.mrf.mxu2  ;;  %v1502_v35 = vpop.f32.mrf.mxu3 }
 0x237   : > { %v1438_v54 = vadd.f32 %v1437_v39, %v1373_v63  ;;  %v1944_v39 = vld [vmem:[%s4114_s7 + $0x90] sm:$0xff] }
 0x238   : > { %2040 = vmatpush.msra.mxu1 %v1944_v39 }
 0x239   : > { %v1503_v2 = vadd.f32 %v1502_v35, %v1438_v54 }
 0x23a   : > { %2041 = vmatpush.msra.mxu1 %v1943_v36 }
 0x23b   : > { %v1545_v41 = vmax.f32 %v1503_v2, 0.0  ;;  %1801 = vmatmul.f32.gmra.mxu2 %v1546_v34  ;;  %v1314_v34 = vadd.f32 %v3834_v8, %v3753_v24  ;;  %v1331_v11 = vpop.f32.mrf.mxu0  ;;  %v1927_v2 = vld [vmem:[%s4114_s7 + $0x8] sm:$0xff] }
 0x23c   : > { %1976 = vmatpush.msra.mxu0 %v1927_v2  ;;  %v1332_v17 = vadd.f32 %v1331_v11, %v3753_v24 }
 0x23d   : > { %1733 = vmatmul.f32.gmra.mxu1 %v1545_v41  ;;  %1863 = vmatmul.f32.gmra.mxu3 %v1545_v41  ;;  %v1379_v6 = vadd.f32 %v1378_v22, %v1314_v34  ;;  %v1926_v34 = vld [vmem:[%s4114_s7] sm:$0xff] }
 0x23e   : > { %v1440_v47 = vpop.f32.mrf.mxu2  ;;  %v1505_v60 = vpop.f32.mrf.mxu3  ;;  %1977 = vmatpush.msra.mxu0 %v1926_v34 }
 0x23f   : > { %v1441_v16 = vadd.f32 %v1440_v47, %v1376_v29 }
 0x241   : > { %v1506_v5 = vadd.f32 %v1505_v60, %v1441_v16 }
 0x243   : > { %v1547_v18 = vmax.f32 %v1506_v5, 0.0  ;;  %1804 = vmatmul.f32.gmra.mxu2 %v1548_v15  ;;  %v1384_v15 = vpop.f32.mrf.mxu1  ;;  %v1334_v49 = vpop.f32.mrf.mxu0  ;;  %v1942_v5 = vld [vmem:[%s4114_s7 + $0x80] sm:$0xff] }
 0x244   : > { %v1385_v56 = vadd.f32 %v1384_v15, %v1320_v25  ;;  %2042 = vmatpush.msra.mxu1 %v1942_v5  ;;  %v1628_v25 = vld [vmem:[%s4113_s6] sm:$0x3] }
 0x245   : > { %1736 = vmatmul.f32.gmra.mxu1 %v1547_v18  ;;  %1866 = vmatmul.f32.gmra.mxu3 %v1547_v18 }
 0x246   : > { %v1443_v50 = vpop.f32.mrf.mxu2  ;;  %v1508_v42 = vpop.f32.mrf.mxu3 }
 0x247   : > { %v1444_v8 = vadd.f32 %v1443_v50, %v1379_v6 }
 0x249   : > { %v1509_v23 = vadd.f32 %v1508_v42, %v1444_v8 }
 0x24b   : > { %v1549_v59 = vmax.f32 %v1509_v23, 0.0  ;;  %1807 = vmatmul.f32.gmra.mxu2 %v1550_v0  ;;  %v1387_v30 = vpop.f32.mrf.mxu1  ;;  %v1651_v53 = vpop.f32.mrf.mxu0  ;;  %v1335_v23 = vadd.f32 %v1334_v49, %v3753_v24  ;;  %v3995_v24 = vperm.slane %v1628_v25, 0 }
 0x24c   : > { %v1388_v63 = vadd.f32 %v1387_v30, %v1323_v37 }
 0x24d   : > { %1739 = vmatmul.f32.gmra.mxu1 %v1549_v59  ;;  %1869 = vmatmul.f32.gmra.mxu3 %v1549_v59  ;;  %v1652_v30 = vadd.f32 %v1651_v53, %v3995_v24 }
 0x24e   : > { %v1446_v31 = vpop.f32.mrf.mxu2  ;;  %v1511_v46 = vpop.f32.mrf.mxu3 }
 0x24f   : > { %v1447_v28 = vadd.f32 %v1446_v31, %v1382_v33 }
 0x251   : > { %v1512_v0 = vadd.f32 %v1511_v46, %v1447_v28 }
 0x253   : > { %v1551_v21 = vmax.f32 %v1512_v0, 0.0  ;;  %1810 = vmatmul.f32.gmra.mxu2 %v1552_v52  ;;  %v1390_v22 = vpop.f32.mrf.mxu1  ;;  %v1654_v50 = vpop.f32.mrf.mxu0 }
 0x254   : > { %v1391_v41 = vadd.f32 %v1390_v22, %v1326_v14  ;;  %v1655_v37 = vadd.f32 %v1654_v50, %v3995_v24 }
 0x255   : > { %1742 = vmatmul.f32.gmra.mxu1 %v1551_v21  ;;  %1872 = vmatmul.f32.gmra.mxu3 %v1551_v21  ;;  %v3998_v21 = vperm.slane %v1628_v25, 1 }
 0x256   : > { %v1449_v1 = vpop.f32.mrf.mxu2  ;;  %v1514_v19 = vpop.f32.mrf.mxu3 }
 0x257   : > { %v1450_v26 = vadd.f32 %v1449_v1, %v1385_v56 }
 0x259   : > { %v1515_v52 = vadd.f32 %v1514_v19, %v1450_v26 }
 0x25b   : > { %v1553_v9 = vmax.f32 %v1515_v52, 0.0  ;;  %1813 = vmatmul.f32.gmra.mxu2 %v1554_v48  ;;  %v1393_v60 = vpop.f32.mrf.mxu1  ;;  %v1657_v62 = vpop.f32.mrf.mxu0 }
 0x25c   : > { %v1394_v16 = vadd.f32 %v1393_v60, %v1329_v27 }
 0x25d   : > { %1745 = vmatmul.f32.gmra.mxu1 %v1553_v9  ;;  %1875 = vmatmul.f32.gmra.mxu3 %v1553_v9 }
 0x25e   : > { %v1452_v44 = vpop.f32.mrf.mxu2  ;;  %v1517_v35 = vpop.f32.mrf.mxu3 }
 0x25f   : > { %v1453_v54 = vadd.f32 %v1452_v44, %v1388_v63 }
 0x261   : > { %v1518_v48 = vadd.f32 %v1517_v35, %v1453_v54  ;;  %v1658_v35 = vadd.f32 %v1657_v62, %v3995_v24 }
 0x263   : > { %v1555_v20 = vmax.f32 %v1518_v48, 0.0  ;;  %1816 = vmatmul.f32.gmra.mxu2 %v1556_v4  ;;  %v1660_v61 = vpop.f32.mrf.mxu0 }
 0x265   : > { %1748 = vmatmul.f32.gmra.mxu1 %v1555_v20  ;;  %1878 = vmatmul.f32.gmra.mxu3 %v1555_v20 }
 0x266   : > { %v1455_v29 = vpop.f32.mrf.mxu2  ;;  %v1520_v40 = vpop.f32.mrf.mxu3 }
 0x267   : > { %v1456_v47 = vadd.f32 %v1455_v29, %v1391_v41 }
 0x269   : > { %v1521_v4 = vadd.f32 %v1520_v40, %v1456_v47  ;;  %v1661_v47 = vadd.f32 %v1660_v61, %v3995_v24 }
 0x26b   : > { %v1557_v3 = vmax.f32 %v1521_v4, 0.0  ;;  %1819 = vmatmul.f32.gmra.mxu2 %v1558_v57  ;;  %v1396_v57 = vpop.f32.mrf.mxu1  ;;  %v1663_v19 = vpop.f32.mrf.mxu0 }
 0x26c   : > { %v1397_v8 = vadd.f32 %v1396_v57, %v1332_v17 }
 0x26d   : > { %1751 = vmatmul.f32.gmra.mxu1 %v1557_v3  ;;  %1881 = vmatmul.f32.gmra.mxu3 %v1557_v3 }
 0x26e   : > { %v1458_v18 = vpop.f32.mrf.mxu2  ;;  %v1523_v45 = vpop.f32.mrf.mxu3 }
 0x26f   : > { %v1459_v6 = vadd.f32 %v1458_v18, %v1394_v16 }
 0x271   : > { %v1524_v32 = vadd.f32 %v1523_v45, %v1459_v6  ;;  %v1664_v45 = vadd.f32 %v1663_v19, %v3995_v24 }
 0x273   : > { %v1559_v42 = vmax.f32 %v1524_v32, 0.0  ;;  %1822 = vmatmul.f32.gmra.mxu2 %v1560_v58  ;;  %v1399_v33 = vpop.f32.mrf.mxu1  ;;  %v1666_v14 = vpop.f32.mrf.mxu0 }
 0x274   : > { %v1400_v31 = vadd.f32 %v1399_v33, %v1335_v23 }
 0x275   : > { %1754 = vmatmul.f32.gmra.mxu1 %v1559_v42  ;;  %1884 = vmatmul.f32.gmra.mxu3 %v1559_v42 }
 0x276   : > { %v1461_v55 = vpop.f32.mrf.mxu2  ;;  %v1526_v15 = vpop.f32.mrf.mxu3 }
 0x277   : > { %v1462_v12 = vadd.f32 %v1461_v55, %v1397_v8 }
 0x279   : > { %v1527_v59 = vadd.f32 %v1526_v15, %v1462_v12  ;;  %v1667_v12 = vadd.f32 %v1666_v14, %v3995_v24 }
 0x27b   : > { %v1561_v38 = vmax.f32 %v1527_v59, 0.0  ;;  %1825 = vmatmul.f32.gmra.mxu2 %v1562_v13  ;;  %v1669_v3 = vpop.f32.mrf.mxu0 }
 0x27d   : > { %1757 = vmatmul.f32.gmra.mxu1 %v1561_v38  ;;  %1887 = vmatmul.f32.gmra.mxu3 %v1561_v38 }
 0x27e   : > { %v1464_v10 = vpop.f32.mrf.mxu2  ;;  %v1529_v46 = vpop.f32.mrf.mxu3 }
 0x27f   : > { %v1465_v58 = vadd.f32 %v1464_v10, %v1400_v31 }
 0x281   : > { %v1530_v28 = vadd.f32 %v1529_v46, %v1465_v58 }
 0x283   : > { %v1563_v0 = vmax.f32 %v1530_v28, 0.0  ;;  %v1672_v42 = vpop.f32.mrf.mxu0  ;;  %v1670_v28 = vadd.f32 %v1669_v3, %v3995_v24 }
 0x285   : > { %1760 = vmatmul.f32.gmra.mxu1 %v1563_v0  ;;  %1890 = vmatmul.f32.gmra.mxu3 %v1563_v0 }
 0x286   : > { %v1781_v13 = vpop.f32.mrf.mxu2 }
 0x287   : > { %v1782_v1 = vadd.f32 %v1781_v13, %v3998_v21 }
 0x28a   : > { %v1716_v11 = vpop.f32.mrf.mxu1 }
 0x28b   : > { %v1717_v43 = vadd.f32 %v1716_v11, %v1652_v30  ;;  %v1675_v58 = vpop.f32.mrf.mxu0 }
 0x28d   : > { %v1894_v56 = vmax.f32 %v1717_v43, 0.0 }
 0x28e   : > { %v1784_v7 = vpop.f32.mrf.mxu2 }
 0x28f   : > { %1978 = vmatmul.f32.vlgmr.msra.gmra.mxu0 %v1894_v56  ;;  %v1785_v39 = vadd.f32 %v1784_v7, %v3998_v21  ;;  %v1673_v7 = vadd.f32 %v1672_v42, %v3995_v24 }
 0x290   : > { %v1846_v26 = vpop.f32.mrf.mxu3 }
 0x291   : > { %v1847_v52 = vadd.f32 %v1846_v26, %v1782_v1 }
 0x292   : > { %v1719_v9 = vpop.f32.mrf.mxu1 }
 0x293   : > { %v1895_v51 = vmax.f32 %v1847_v52, 0.0  ;;  %v1720_v63 = vadd.f32 %v1719_v9, %v1655_v37  ;;  %v1678_v19 = vpop.f32.mrf.mxu0 }
 0x295   : > { %v1896_v22 = vmax.f32 %v1720_v63, 0.0  ;;  %2043 = vmatmul.f32.vlgmr.msra.gmra.mxu1 %v1895_v51 }
 0x296   : > { %v1787_v49 = vpop.f32.mrf.mxu2 }
 0x297   : > { %1981 = vmatmul.f32.gmra.mxu0 %v1896_v22  ;;  %v1788_v29 = vadd.f32 %v1787_v49, %v3998_v21  ;;  %v1676_v49 = vadd.f32 %v1675_v58, %v3995_v24 }
 0x298   : > { %v1849_v44 = vpop.f32.mrf.mxu3 }
 0x299   : > { %v1850_v54 = vadd.f32 %v1849_v44, %v1785_v39 }
 0x29a   : > { %v1722_v48 = vpop.f32.mrf.mxu1 }
 0x29b   : > { %v1897_v20 = vmax.f32 %v1850_v54, 0.0  ;;  %v1723_v2 = vadd.f32 %v1722_v48, %v1658_v35  ;;  %v1681_v14 = vpop.f32.mrf.mxu0 }
 0x29d   : > { %v1898_v41 = vmax.f32 %v1723_v2, 0.0  ;;  %2046 = vmatmul.f32.gmra.mxu1 %v1897_v20 }
 0x29e   : > { %v1790_v36 = vpop.f32.mrf.mxu2 }
 0x29f   : > { %1984 = vmatmul.f32.gmra.mxu0 %v1898_v41  ;;  %v1791_v5 = vadd.f32 %v1790_v36, %v3998_v21  ;;  %v1679_v36 = vadd.f32 %v1678_v19, %v3995_v24 }
 0x2a0   : > { %v1852_v40 = vpop.f32.mrf.mxu3 }
 0x2a1   : > { %v1853_v60 = vadd.f32 %v1852_v40, %v1788_v29 }
 0x2a2   : > { %v1725_v53 = vpop.f32.mrf.mxu1 }
 0x2a3   : > { %v1899_v27 = vmax.f32 %v1853_v60, 0.0  ;;  %v1726_v4 = vadd.f32 %v1725_v53, %v1661_v47 }
 0x2a5   : > { %v1900_v16 = vmax.f32 %v1726_v4, 0.0  ;;  %2049 = vmatmul.f32.gmra.mxu1 %v1899_v27  ;;  %v1684_v27 = vpop.f32.mrf.mxu0 }
 0x2a6   : > { %v1793_v34 = vpop.f32.mrf.mxu2 }
 0x2a7   : > { %1987 = vmatmul.f32.gmra.mxu0 %v1900_v16  ;;  %v1794_v55 = vadd.f32 %v1793_v34, %v3998_v21  ;;  %v1682_v34 = vadd.f32 %v1681_v14, %v3995_v24 }
 0x2a8   : > { %v1855_v18 = vpop.f32.mrf.mxu3 }
 0x2a9   : > { %v1856_v6 = vadd.f32 %v1855_v18, %v1791_v5 }
 0x2aa   : > { %v1728_v17 = vpop.f32.mrf.mxu1 }
 0x2ab   : > { %v1901_v32 = vmax.f32 %v1856_v6, 0.0  ;;  %v1729_v57 = vadd.f32 %v1728_v17, %v1664_v45 }
 0x2ad   : > { %v1902_v50 = vmax.f32 %v1729_v57, 0.0  ;;  %2052 = vmatmul.f32.gmra.mxu1 %v1901_v32 }
 0x2ae   : > { %v1796_v8 = vpop.f32.mrf.mxu2 }
 0x2af   : > { %1990 = vmatmul.f32.gmra.mxu0 %v1902_v50  ;;  %v1797_v10 = vadd.f32 %v1796_v8, %v3998_v21  ;;  %v1687_v50 = vpop.f32.mrf.mxu0  ;;  %v1685_v8 = vadd.f32 %v1684_v27, %v3995_v24 }
 0x2b0   : > { %v1858_v15 = vpop.f32.mrf.mxu3 }
 0x2b1   : > { %v1859_v23 = vadd.f32 %v1858_v15, %v1794_v55 }
 0x2b2   : > { %v1731_v59 = vpop.f32.mrf.mxu1 }
 0x2b3   : > { %v1903_v38 = vmax.f32 %v1859_v23, 0.0  ;;  %v1732_v33 = vadd.f32 %v1731_v59, %v1667_v12 }
 0x2b5   : > { %v1904_v62 = vmax.f32 %v1732_v33, 0.0  ;;  %2055 = vmatmul.f32.gmra.mxu1 %v1903_v38 }
 0x2b6   : > { %v1799_v31 = vpop.f32.mrf.mxu2 }
 0x2b7   : > { %1993 = vmatmul.f32.gmra.mxu0 %v1904_v62  ;;  %v1800_v43 = vadd.f32 %v1799_v31, %v3998_v21  ;;  %v1688_v31 = vadd.f32 %v1687_v50, %v3995_v24  ;;  %v1690_v58 = vpop.f32.mrf.mxu0 }
 0x2b8   : > { %v1861_v46 = vpop.f32.mrf.mxu3 }
 0x2b9   : > { %v1862_v25 = vadd.f32 %v1861_v46, %v1797_v10 }
 0x2ba   : > { %v1734_v0 = vpop.f32.mrf.mxu1 }
 0x2bb   : > { %v1905_v61 = vmax.f32 %v1862_v25, 0.0  ;;  %v1735_v13 = vadd.f32 %v1734_v0, %v1670_v28 }
 0x2bd   : > { %v1906_v30 = vmax.f32 %v1735_v13, 0.0  ;;  %2058 = vmatmul.f32.gmra.mxu1 %v1905_v61 }
 0x2be   : > { %v1802_v11 = vpop.f32.mrf.mxu2 }
 0x2bf   : > { %1996 = vmatmul.f32.gmra.mxu0 %v1906_v30  ;;  %v1803_v63 = vadd.f32 %v1802_v11, %v3998_v21  ;;  %v1691_v11 = vadd.f32 %v1690_v58, %v3995_v24  ;;  %v1693_v19 = vpop.f32.mrf.mxu0 }
 0x2c0   : > { %v1864_v56 = vpop.f32.mrf.mxu3 }
 0x2c1   : > { %v1865_v1 = vadd.f32 %v1864_v56, %v1800_v43 }
 0x2c2   : > { %v1737_v26 = vpop.f32.mrf.mxu1 }
 0x2c3   : > { %v1907_v37 = vmax.f32 %v1865_v1, 0.0  ;;  %v1738_v52 = vadd.f32 %v1737_v26, %v1673_v7 }
 0x2c5   : > { %v1908_v9 = vmax.f32 %v1738_v52, 0.0  ;;  %2061 = vmatmul.f32.gmra.mxu1 %v1907_v37 }
 0x2c6   : > { %v1805_v51 = vpop.f32.mrf.mxu2 }
 0x2c7   : > { %1999 = vmatmul.f32.gmra.mxu0 %v1908_v9  ;;  %v1806_v2 = vadd.f32 %v1805_v51, %v3998_v21  ;;  %v1694_v9 = vadd.f32 %v1693_v19, %v3995_v24 }
 0x2c8   : > { %v1867_v22 = vpop.f32.mrf.mxu3 }
 0x2c9   : > { %v1868_v39 = vadd.f32 %v1867_v22, %v1803_v63 }
 0x2ca   : > { %v1740_v44 = vpop.f32.mrf.mxu1 }
 0x2cb   : > { %v1909_v35 = vmax.f32 %v1868_v39, 0.0  ;;  %v1741_v54 = vadd.f32 %v1740_v44, %v1676_v49 }
 0x2cd   : > { %v1910_v48 = vmax.f32 %v1741_v54, 0.0  ;;  %2064 = vmatmul.f32.gmra.mxu1 %v1909_v35  ;;  %v1696_v35 = vpop.f32.mrf.mxu0 }
 0x2ce   : > { %v1808_v20 = vpop.f32.mrf.mxu2 }
 0x2cf   : > { %2002 = vmatmul.f32.gmra.mxu0 %v1910_v48  ;;  %v1809_v3 = vadd.f32 %v1808_v20, %v3998_v21  ;;  %v1697_v48 = vadd.f32 %v1696_v35, %v3995_v24  ;;  %v4035_v24 = vld [vmem:[%s4115_s8] ss:$0 sm:$0xff] }
 0x2d0   : > { %v1870_v41 = vpop.f32.mrf.mxu3 }
 0x2d1   : > { %v1871_v29 = vadd.f32 %v1870_v41, %v1806_v2 }
 0x2d2   : > { %v1743_v40 = vpop.f32.mrf.mxu1 }
 0x2d3   : > { %v1911_v47 = vmax.f32 %v1871_v29, 0.0  ;;  %v1744_v60 = vadd.f32 %v1743_v40, %v1679_v36 }
 0x2d5   : > { %v1912_v53 = vmax.f32 %v1744_v60, 0.0  ;;  %2067 = vmatmul.f32.gmra.mxu1 %v1911_v47 }
 0x2d6   : > { %v1811_v4 = vpop.f32.mrf.mxu2 }
 0x2d7   : > { %2005 = vmatmul.f32.gmra.mxu0 %v1912_v53  ;;  %v1812_v57 = vadd.f32 %v1811_v4, %v3998_v21 }
 0x2d8   : > { %v1873_v16 = vpop.f32.mrf.mxu3 }
 0x2d9   : > { %v1874_v5 = vadd.f32 %v1873_v16, %v1809_v3 }
 0x2da   : > { %v1746_v18 = vpop.f32.mrf.mxu1 }
 0x2db   : > { %v1913_v45 = vmax.f32 %v1874_v5, 0.0  ;;  %v1747_v6 = vadd.f32 %v1746_v18, %v1682_v34 }
 0x2dd   : > { %v1914_v17 = vmax.f32 %v1747_v6, 0.0  ;;  %2070 = vmatmul.f32.gmra.mxu1 %v1913_v45 }
 0x2de   : > { %v1814_v32 = vpop.f32.mrf.mxu2 }
 0x2df   : > { %2008 = vmatmul.f32.gmra.mxu0 %v1914_v17  ;;  %v1815_v33 = vadd.f32 %v1814_v32, %v3998_v21 }
 0x2e0   : > { %v1876_v42 = vpop.f32.mrf.mxu3 }
 0x2e1   : > { %v1877_v55 = vadd.f32 %v1876_v42, %v1812_v57 }
 0x2e2   : > { %v1749_v15 = vpop.f32.mrf.mxu1 }
 0x2e3   : > { %v1915_v12 = vmax.f32 %v1877_v55, 0.0  ;;  %v1750_v23 = vadd.f32 %v1749_v15, %v1685_v8 }
 0x2e5   : > { %v1916_v59 = vmax.f32 %v1750_v23, 0.0  ;;  %2073 = vmatmul.f32.gmra.mxu1 %v1915_v12 }
 0x2e6   : > { %v1817_v38 = vpop.f32.mrf.mxu2 }
 0x2e7   : > { %2011 = vmatmul.f32.gmra.mxu0 %v1916_v59  ;;  %v1818_v61 = vadd.f32 %v1817_v38, %v3998_v21 }
 0x2e8   : > { %v1879_v62 = vpop.f32.mrf.mxu3 }
 0x2e9   : > { %v1880_v10 = vadd.f32 %v1879_v62, %v1815_v33 }
 0x2ea   : > { %v1752_v46 = vpop.f32.mrf.mxu1 }
 0x2eb   : > { %v1917_v28 = vmax.f32 %v1880_v10, 0.0  ;;  %v1753_v25 = vadd.f32 %v1752_v46, %v1688_v31 }
 0x2ed   : > { %v1918_v0 = vmax.f32 %v1753_v25, 0.0  ;;  %2076 = vmatmul.f32.gmra.mxu1 %v1917_v28 }
 0x2ee   : > { %v1820_v13 = vpop.f32.mrf.mxu2 }
 0x2ef   : > { %2014 = vmatmul.f32.gmra.mxu0 %v1918_v0  ;;  %v1821_v37 = vadd.f32 %v1820_v13, %v3998_v21 }
 0x2f0   : > { %v1882_v30 = vpop.f32.mrf.mxu3 }
 0x2f1   : > { %v1883_v43 = vadd.f32 %v1882_v30, %v1818_v61 }
 0x2f2   : > { %v1755_v56 = vpop.f32.mrf.mxu1 }
 0x2f3   : > { %v1919_v7 = vmax.f32 %v1883_v43, 0.0  ;;  %v1756_v1 = vadd.f32 %v1755_v56, %v1691_v11 }
 0x2f5   : > { %v1920_v26 = vmax.f32 %v1756_v1, 0.0  ;;  %2079 = vmatmul.f32.gmra.mxu1 %v1919_v7 }
 0x2f6   : > { %v1823_v63 = vpop.f32.mrf.mxu2 }
 0x2f7   : > { %2017 = vmatmul.f32.gmra.mxu0 %v1920_v26  ;;  %v1824_v54 = vadd.f32 %v1823_v63, %v3998_v21 }
 0x2f8   : > { %v1885_v52 = vpop.f32.mrf.mxu3 }
 0x2f9   : > { %v1886_v51 = vadd.f32 %v1885_v52, %v1821_v37 }
 0x2fa   : > { %v1758_v22 = vpop.f32.mrf.mxu1 }
 0x2fb   : > { %v1921_v49 = vmax.f32 %v1886_v51, 0.0  ;;  %v1759_v39 = vadd.f32 %v1758_v22, %v1694_v9 }
 0x2fd   : > { %v1922_v44 = vmax.f32 %v1759_v39, 0.0  ;;  %2082 = vmatmul.f32.gmra.mxu1 %v1921_v49 }
 0x2fe   : > { %v1826_v29 = vpop.f32.mrf.mxu2 }
 0x2ff   : > { %2020 = vmatmul.f32.gmra.mxu0 %v1922_v44  ;;  %v1827_v47 = vadd.f32 %v1826_v29, %v3998_v21 }
 0x300   : > { %v1888_v14 = vpop.f32.mrf.mxu3 }
 0x301   : > { %v1889_v20 = vadd.f32 %v1888_v14, %v1824_v54 }
 0x302   : > { %v1761_v2 = vpop.f32.mrf.mxu1 }
 0x303   : > { %v1923_v41 = vmax.f32 %v1889_v20, 0.0  ;;  %v1762_v36 = vadd.f32 %v1761_v2, %v1697_v48 }
 0x305   : > { %v1924_v40 = vmax.f32 %v1762_v36, 0.0  ;;  %2085 = vmatmul.f32.gmra.mxu1 %v1923_v41 }
 0x307   : > { %2023 = vmatmul.f32.gmra.mxu0 %v1924_v40 }
 0x308   : > { %v1891_v60 = vpop.f32.mrf.mxu3 }
 0x309   : > { %v1892_v53 = vadd.f32 %v1891_v60, %v1827_v47 }
 0x30b   : > { %v1925_v27 = vmax.f32 %v1892_v53, 0.0 }
 0x30c   : > { %v1979_v4 = vpop.f32.mrf.mxu0 }
 0x30d   : > { %2088 = vmatmul.f32.gmra.mxu1 %v1925_v27  ;;  %v1980_v3 = vadd.f32 %v4035_v24, %v1979_v4 }
 0x312   : > { %v2044_v16 = vpop.f32.mrf.mxu1 }
 0x313   : > { %v2045_v34 = vadd.f32 %v2044_v16, %v1980_v3 }
 0x314   : > { %v1982_v5 = vpop.f32.mrf.mxu0 }
 0x315   : > { %2092 = vst [vmem:[%s4040_s29] sm:$0xff] %v2045_v34  ;;  %v1983_v21 = vadd.f32 %v4035_v24, %v1982_v5 }
 0x31a   : > { %v2047_v18 = vpop.f32.mrf.mxu1 }
 0x31b   : > { %v2048_v45 = vadd.f32 %v2047_v18, %v1983_v21 }
 0x31c   : > { %v1985_v6 = vpop.f32.mrf.mxu0 }
 0x31d   : > { %2093 = vst [vmem:[%s4040_s29 + $0x8] sm:$0xff] %v2048_v45  ;;  %v1986_v17 = vadd.f32 %v4035_v24, %v1985_v6 }
 0x322   : > { %v2050_v32 = vpop.f32.mrf.mxu1 }
 0x323   : > { %v2051_v57 = vadd.f32 %v2050_v32, %v1986_v17 }
 0x324   : > { %v1988_v50 = vpop.f32.mrf.mxu0 }
 0x325   : > { %2094 = vst [vmem:[%s4040_s29 + $0x10] sm:$0xff] %v2051_v57  ;;  %v1989_v42 = vadd.f32 %v4035_v24, %v1988_v50 }
 0x32a   : > { %v2053_v8 = vpop.f32.mrf.mxu1 }
 0x32b   : > { %v2054_v55 = vadd.f32 %v2053_v8, %v1989_v42 }
 0x32c   : > { %v1991_v15 = vpop.f32.mrf.mxu0 }
 0x32d   : > { %2095 = vst [vmem:[%s4040_s29 + $0x18] sm:$0xff] %v2054_v55  ;;  %v1992_v12 = vadd.f32 %v4035_v24, %v1991_v15 }
 0x332   : > { %v2056_v23 = vpop.f32.mrf.mxu1 }
 0x333   : > { %v2057_v59 = vadd.f32 %v2056_v23, %v1992_v12 }
 0x334   : > { %v1994_v38 = vpop.f32.mrf.mxu0 }
 0x335   : > { %2096 = vst [vmem:[%s4040_s29 + $0x20] sm:$0xff] %v2057_v59  ;;  %v1995_v33 = vadd.f32 %v4035_v24, %v1994_v38 }
 0x33a   : > { %v2059_v62 = vpop.f32.mrf.mxu1 }
 0x33b   : > { %v2060_v31 = vadd.f32 %v2059_v62, %v1995_v33 }
 0x33c   : > { %v1997_v10 = vpop.f32.mrf.mxu0 }
 0x33d   : > { %2097 = vst [vmem:[%s4040_s29 + $0x28] sm:$0xff] %v2060_v31  ;;  %v1998_v58 = vadd.f32 %v4035_v24, %v1997_v10 }
 0x342   : > { %v2062_v46 = vpop.f32.mrf.mxu1 }
 0x343   : > { %v2063_v28 = vadd.f32 %v2062_v46, %v1998_v58 }
 0x344   : > { %v2000_v25 = vpop.f32.mrf.mxu0 }
 0x345   : > { %2098 = vst [vmem:[%s4040_s29 + $0x30] sm:$0xff] %v2063_v28  ;;  %v2001_v0 = vadd.f32 %v4035_v24, %v2000_v25 }
 0x34a   : > { %v2065_v61 = vpop.f32.mrf.mxu1 }
 0x34b   : > { %v2066_v13 = vadd.f32 %v2065_v61, %v2001_v0 }
 0x34c   : > { %v2003_v30 = vpop.f32.mrf.mxu0 }
 0x34d   : > { %2099 = vst [vmem:[%s4040_s29 + $0x38] sm:$0xff] %v2066_v13  ;;  %v2004_v11 = vadd.f32 %v4035_v24, %v2003_v30 }
 0x352   : > { %v2068_v43 = vpop.f32.mrf.mxu1 }
 0x353   : > { %v2069_v56 = vadd.f32 %v2068_v43, %v2004_v11 }
 0x354   : > { %v2006_v7 = vpop.f32.mrf.mxu0 }
 0x355   : > { %2100 = vst [vmem:[%s4040_s29 + $0x40] sm:$0xff] %v2069_v56  ;;  %v2007_v1 = vadd.f32 %v4035_v24, %v2006_v7 }
 0x35a   : > { %v2071_v19 = vpop.f32.mrf.mxu1 }
 0x35b   : > { %v2072_v26 = vadd.f32 %v2071_v19, %v2007_v1 }
 0x35c   : > { %v2009_v37 = vpop.f32.mrf.mxu0 }
 0x35d   : > { %2101 = vst [vmem:[%s4040_s29 + $0x48] sm:$0xff] %v2072_v26  ;;  %v2010_v52 = vadd.f32 %v4035_v24, %v2009_v37 }
 0x362   : > { %v2074_v9 = vpop.f32.mrf.mxu1 }
 0x363   : > { %v2075_v51 = vadd.f32 %v2074_v9, %v2010_v52 }
 0x364   : > { %v2012_v63 = vpop.f32.mrf.mxu0 }
 0x365   : > { %2102 = vst [vmem:[%s4040_s29 + $0x50] sm:$0xff] %v2075_v51  ;;  %v2013_v22 = vadd.f32 %v4035_v24, %v2012_v63 }
 0x36a   : > { %v2077_v49 = vpop.f32.mrf.mxu1 }
 0x36b   : > { %v2078_v39 = vadd.f32 %v2077_v49, %v2013_v22 }
 0x36c   : > { %v2015_v44 = vpop.f32.mrf.mxu0 }
 0x36d   : > { %2103 = vst [vmem:[%s4040_s29 + $0x58] sm:$0xff] %v2078_v39  ;;  %v2016_v35 = vadd.f32 %v4035_v24, %v2015_v44 }
 0x372   : > { %v2080_v54 = vpop.f32.mrf.mxu1 }
 0x373   : > { %v2081_v14 = vadd.f32 %v2080_v54, %v2016_v35 }
 0x374   : > { %v2018_v48 = vpop.f32.mrf.mxu0 }
 0x375   : > { %2104 = vst [vmem:[%s4040_s29 + $0x60] sm:$0xff] %v2081_v14  ;;  %v2019_v20 = vadd.f32 %v4035_v24, %v2018_v48 }
 0x37a   : > { %v2083_v2 = vpop.f32.mrf.mxu1 }
 0x37b   : > { %v2084_v41 = vadd.f32 %v2083_v2, %v2019_v20 }
 0x37c   : > { %v2021_v36 = vpop.f32.mrf.mxu0 }
 0x37d   : > { %2105 = vst [vmem:[%s4040_s29 + $0x68] sm:$0xff] %v2084_v41  ;;  %v2022_v29 = vadd.f32 %v4035_v24, %v2021_v36 }
 0x382   : > { %v2086_v40 = vpop.f32.mrf.mxu1 }
 0x383   : > { %v2087_v47 = vadd.f32 %v2086_v40, %v2022_v29 }
 0x384   : > { %v2024_v60 = vpop.f32.mrf.mxu0 }
 0x385   : > { %2106 = vst [vmem:[%s4040_s29 + $0x70] sm:$0xff] %v2087_v47  ;;  %v2025_v53 = vadd.f32 %v4035_v24, %v2024_v60 }
 0x38a   : > { %v2089_v27 = vpop.f32.mrf.mxu1 }
 0x38b   : > { %v2090_v4 = vadd.f32 %v2089_v27, %v2025_v53 }
 0x38d   : > { %2107 = vst [vmem:[%s4040_s29 + $0x78] sm:$0xff] %v2090_v4 }
 0x38e   : > { %2533 = shalt.err (!%p2530_p8)
}
 0x38f   : > { %s2586_s22 = smov 128   ;;  %s2587_s28 = smov 8  }
 0x390   : > { %2316 = dma.vmem_to_hbm [thread:$0]  (%p2676_p5), %s2122_s21, 2048, %s2124_s24, %s2109_s13, %s2586_s22, %s2586_s22, %s2587_s28  }
 0x391 PF: > { %p2338_p9 = scmp.ge.s32.totalorder %s2576_s12, 2  ;;  %s2138_s29 = sand.u32 1, %s2564_s30  }
 0x392   : > { %s2139_s3 = scalar_lea.sflag [#allocation4], %s2138_s29 }
 0x393   : > { %p2329_p10 = pnand %p2338_p9, %p2680_p6 }
 0x395   : > { %p2330_p11 = pneg %p2329_p10 }
 0x397   : > { %2559 = dma.done.wait (%p2330_p11), %s2139_s3, 2048  }
 0x398   : > { %2561 = vsyncadd (%p2330_p11), %s2139_s3, 4294965248  ;;  %s4273_s1 = sld [smem:[#allocation12_spill]]  ;;  %p21_p12 = scmp.ge.s32.totalorder %s2663_s15, 4  }
 0x399   : > { %s4274_s11 = sld [smem:[#allocation13_spill]]  ;;  %s4275_s30 = smov %s2568_s10 }
 0x39a   : > { %s4277_s12 = smov %s2663_s15  ;;  %23 = sbr.rel (!%p21_p12) target bundleno = 8 (0x8), region = 104 }
 0x39e   : > { %s4276_s10 = smov %s4273_s1 }
 0x39f   :  { %2145 = vsyncpa [#allocation3], 1 }
 0x3a0   :  { %2147 = vsyncpa [#allocation3 + $0x1], 1 }
 0x3a1   :  { %2148 = vsyncpa [#allocation6], 1 }
 0x3a2   :  { %2149 = vsyncpa [#allocation4], 1 }
 0x3a3   :  { %2151 = vsyncpa [#allocation4 + $0x1], 1 }

</bundles_post_ra>
